<compile_context>
chip_gen: v7x
topology: tpu7x:2x2x1
jax: 0.10.0
libtpu: 0.0.40
codegen_flags: <defaults>
</compile_context>

<pallas_src>
import math

import jax
import jax.numpy as jnp
from jax.experimental import pallas as pl
from jax.experimental.pallas import tpu as pltpu

NOISY_LAYER_STD = 0.1  # Config.NOISY_LAYER_STD


# ----------------------------------------------------------------------------
# Helpers
# ----------------------------------------------------------------------------
def _round_up(x, m):
    return ((x + m - 1) // m) * m


def _pick_tile(dim_pad, cap):
    """dim_pad, cap: multiples of 128.

    Minimise the number of tiles given the cap, then even out the tile size
    (128-aligned) and pad the dim up to tiles*tile.  Avoids the old
    divisibility rule that collapsed tiles to 128 and made per-step overhead
    dominate small layers.
    """
    n_tiles = -(-dim_pad // cap)                      # ceil div
    tile = _round_up(-(-dim_pad // n_tiles), 128)
    return tile, n_tiles * tile


def _pad2(a, rows, cols):
    return jnp.pad(a, ((0, rows - a.shape[0]), (0, cols - a.shape[1])))


# ----------------------------------------------------------------------------
# Kernels
# ----------------------------------------------------------------------------
def _noisy_kernel(x_ref, xn_ref, wmu_ref, wsig_ref, eout_ref, bias_ref,
                  o_ref, acc_mu, acc_sig):
    """Training path: y = x@Wmu + eps_out*(x_noisy@Wsig) + bias (all tiles)."""
    k = pl.program_id(1)

    @pl.when(k == 0)
    def _():
        acc_mu[...] = jnp.zeros_like(acc_mu)
        acc_sig[...] = jnp.zeros_like(acc_sig)

    acc_mu[...] += jnp.dot(x_ref[...], wmu_ref[...],
                           preferred_element_type=jnp.float32)
    acc_sig[...] += jnp.dot(xn_ref[...], wsig_ref[...],
                            preferred_element_type=jnp.float32)

    @pl.when(k == pl.num_programs(1) - 1)
    def _():
        # eps_out scale applied once here (not every K step).
        o_ref[...] = (acc_mu[...] + acc_sig[...] * eout_ref[...]
                      + bias_ref[...]).astype(o_ref.dtype)


def _linear_kernel(x_ref, w_ref, bias_ref, o_ref, acc):
    """Single-matmul path (eval / folded-noise): y = x@W + bias."""
    k = pl.program_id(1)

    @pl.when(k == 0)
    def _():
        acc[...] = jnp.zeros_like(acc)

    acc[...] += jnp.dot(x_ref[...], w_ref[...],
                        preferred_element_type=jnp.float32)

    @pl.when(k == pl.num_programs(1) - 1)
    def _():
        o_ref[...] = (acc[...] + bias_ref[...]).astype(o_ref.dtype)


# ----------------------------------------------------------------------------
# One-time parameter preparation (hoisted transpose + pad + bias combine).
# Call once per parameter update / noise reset, NOT per forward.
# ----------------------------------------------------------------------------
def prepare_noisy_linear_params(weight_mu, weight_sigma, eps_in, eps_out,
                                bias_mu, bias_sigma, bias_epsilon,
                                *, param_dtype=jnp.float32,
                                tk_cap=1024, tn_cap=512):
    """Pre-transpose weights to (K_pad, N_pad), pad noise/bias vectors, and
    choose tiles.  tk/tn caps keep double-buffered weight streams well under
    the scoped-VMEM defaults on v5e/v6e/v7x (1024x512 f32 tile = 2 MiB);
    caps are multiples of 256 so the v6e/v7x 256x256 MXU fills per pass.
    """
    N, K = weight_mu.shape
    tk, K_pad = _pick_tile(_round_up(K, 128), tk_cap)
    tn, N_pad = _pick_tile(_round_up(N, 128), tn_cap)
    # NOTE(v7x): if N_pad/tn == 1 and the layer is large, halving tn gives
    # both TensorCores work via the "parallel" N axis; left as-is for small
    # layers where a (1,1) grid is strictly better.

    wmu_t = _pad2(weight_mu.T, K_pad, N_pad).astype(param_dtype)
    wsig_t = _pad2(weight_sigma.T, K_pad, N_pad).astype(param_dtype)

    eps_in_p = jnp.pad(eps_in, (0, K_pad - K)).astype(jnp.float32)
    eps_out_p = jnp.pad(eps_out, (0, N_pad - N)).reshape(1, N_pad).astype(jnp.float32)
    bias_mu_p = jnp.pad(bias_mu, (0, N_pad - N)).reshape(1, N_pad).astype(jnp.float32)
    bias_train = bias_mu + bias_sigma * bias_epsilon
    bias_train_p = jnp.pad(bias_train, (0, N_pad - N)).reshape(1, N_pad).astype(jnp.float32)

    return dict(K=K, N=N, K_pad=K_pad, N_pad=N_pad, tk=tk, tn=tn,
                param_dtype=param_dtype,
                wmu_t=wmu_t, wsig_t=wsig_t,
                eps_in=eps_in_p, eps_out=eps_out_p,
                bias_mu=bias_mu_p, bias_train=bias_train_p,
                folded=False)


def fold_noisy_weights(p):
    """Fold the current noise sample into one effective weight/bias.

    Use when the same noise is reused across many forwards (typical DQN:
    several minibatches per reset_noise): halves steady-state weight HBM
    bytes by running the single-matmul kernel.
    """
    w_eps_t = p["eps_in"][:, None] * p["eps_out"]          # outer(eps_out,eps_in)^T
    w_eff = (p["wmu_t"].astype(jnp.float32)
             + p["wsig_t"].astype(jnp.float32) * w_eps_t)
    q = dict(p)
    q["wmu_t"] = w_eff.astype(p["param_dtype"])
    q["bias_mu"] = p["bias_train"]
    q["folded"] = True
    return q


# ----------------------------------------------------------------------------
# Forward
# ----------------------------------------------------------------------------
def noisy_linear_forward(x, p, *, training=True):
    """x: (B, in_features) -> (B, out_features).  `p` from prepare_*()."""
    B, K = x.shape
    assert K == p["K"], "in_features mismatch"
    K_pad, N_pad, tk, tn = p["K_pad"], p["N_pad"], p["tk"], p["tn"]
    pd = p["param_dtype"]
    out_dtype = x.dtype
    itemsize_w = jnp.dtype(pd).itemsize

    B_pad = _round_up(B, 8)
    x_p = jnp.pad(x, ((0, B_pad - B), (0, K_pad - K)))

    grid = (N_pad // tn, K_pad // tk)
    dims = ("parallel", "arbitrary")

    if training and not p["folded"]:
        # Factored-noise two-matmul path.  x*eps_in built here in f32
        # (v5e VPU has no bf16), then both activations cast to param dtype.
        xn_p = x_p * p["eps_in"][None, :]
        x_in = x_p.astype(pd)
        xn_in = xn_p.astype(pd)

        cost = pl.CostEstimate(
            flops=4 * B_pad * K_pad * N_pad,
            transcendentals=0,
            bytes_accessed=(2 * K_pad * N_pad * itemsize_w
                            + 2 * B_pad * K_pad * itemsize_w
                            + B_pad * N_pad * jnp.dtype(out_dtype).itemsize
                            + 2 * N_pad * 4))

        out = pl.pallas_call(
            _noisy_kernel,
            out_shape=jax.ShapeDtypeStruct((B_pad, N_pad), out_dtype),
            grid_spec=pltpu.PrefetchScalarGridSpec(
                num_scalar_prefetch=0,
                grid=grid,
                in_specs=[
                    pl.BlockSpec((B_pad, tk), lambda j, k: (0, k)),   # x
                    pl.BlockSpec((B_pad, tk), lambda j, k: (0, k)),   # x*eps_in
                    pl.BlockSpec((tk, tn), lambda j, k: (k, j)),      # W_mu^T
                    pl.BlockSpec((tk, tn), lambda j, k: (k, j)),      # W_sigma^T
                    pl.BlockSpec((1, tn), lambda j, k: (0, j)),       # eps_out
                    pl.BlockSpec((1, tn), lambda j, k: (0, j)),       # bias (combined)
                ],
                out_specs=pl.BlockSpec((B_pad, tn), lambda j, k: (0, j)),
                scratch_shapes=[pltpu.VMEM((B_pad, tn), jnp.float32),
                                pltpu.VMEM((B_pad, tn), jnp.float32)],
            ),
            compiler_params=pltpu.CompilerParams(dimension_semantics=dims),
            cost_estimate=cost,
        )(x_in, xn_in, p["wmu_t"], p["wsig_t"], p["eps_out"], p["bias_train"])
    else:
        # Single-matmul path:
        #  * training=False      -> weight = W_mu,  bias = bias_mu  (module eval)
        #  * folded params       -> weight = W_eff, bias = bias_mu + sig*eps
        x_in = x_p.astype(pd)
        cost = pl.CostEstimate(
            flops=2 * B_pad * K_pad * N_pad,
            transcendentals=0,
            bytes_accessed=(K_pad * N_pad * itemsize_w
                            + B_pad * K_pad * itemsize_w
                            + B_pad * N_pad * jnp.dtype(out_dtype).itemsize
                            + N_pad * 4))

        out = pl.pallas_call(
            _linear_kernel,
            out_shape=jax.ShapeDtypeStruct((B_pad, N_pad), out_dtype),
            grid_spec=pltpu.PrefetchScalarGridSpec(
                num_scalar_prefetch=0,
                grid=grid,
                in_specs=[
                    pl.BlockSpec((B_pad, tk), lambda j, k: (0, k)),   # x
                    pl.BlockSpec((tk, tn), lambda j, k: (k, j)),      # W^T
                    pl.BlockSpec((1, tn), lambda j, k: (0, j)),       # bias
                ],
                out_specs=pl.BlockSpec((B_pad, tn), lambda j, k: (0, j)),
                scratch_shapes=[pltpu.VMEM((B_pad, tn), jnp.float32)],
            ),
            compiler_params=pltpu.CompilerParams(dimension_semantics=dims),
            cost_estimate=cost,
        )(x_in, p["wmu_t"], p["bias_mu"])

    return out[:B, :p["N"]]


# ----------------------------------------------------------------------------
# Deterministic parameter / noise construction (mirrors __init__ +
# reset_parameters + reset_noise of the PyTorch module; noise kept factored).
# ----------------------------------------------------------------------------
def transform_noise(x):
    return jnp.sign(x) * jnp.sqrt(jnp.abs(x))


def make_noisy_linear_params(key, in_features, out_features, std_init=0.4):
    k_wmu, k_bmu, k_nin, k_now, k_nob = jax.random.split(key, 5)
    mu_range = 1.0 / math.sqrt(in_features)

    weight_mu = jax.random.uniform(
        k_wmu, (out_features, in_features),
        minval=-mu_range, maxval=mu_range, dtype=jnp.float32)
    weight_sigma = jnp.full((out_features, in_features),
                            std_init / math.sqrt(in_features), jnp.float32)
    bias_mu = jax.random.uniform(
        k_bmu, (out_features,),
        minval=-mu_range, maxval=mu_range, dtype=jnp.float32)
    bias_sigma = jnp.full((out_features,),
                          std_init / math.sqrt(out_features), jnp.float32)

    noise_in = NOISY_LAYER_STD * jax.random.normal(
        k_nin, (in_features,), jnp.float32)
    noise_out_weight = NOISY_LAYER_STD * jax.random.normal(
        k_now, (out_features,), jnp.float32)
    noise_out_bias = NOISY_LAYER_STD * jax.random.normal(
        k_nob, (out_features,), jnp.float32)

    eps_in = transform_noise(noise_in)              # (in,)
    eps_out = transform_noise(noise_out_weight)     # (out,)
    bias_epsilon = transform_noise(noise_out_bias)  # (out,)

    return (weight_mu, weight_sigma, eps_in, eps_out,
            bias_mu, bias_sigma, bias_epsilon)


if __name__ == "__main__":
    key = jax.random.PRNGKey(0)
    k_params, k_x = jax.random.split(key)

    # Shapes chosen to exercise multi-tile grid with the new tiling:
    # K=1500 -> K_pad=1536, tk=768 (2 K steps); N=700 -> N_pad=768, tn=384
    # (2 parallel N tiles); B=6 exercises batch padding to 8.
    batch, in_features, out_features = 6, 1500, 700
    raw = make_noisy_linear_params(k_params, in_features, out_features)
    wmu, wsig, eps_in, eps_out, bmu, bsig, beps = raw
    x = jax.random.normal(k_x, (batch, in_features), jnp.float32)

    # Pure-JAX reference of the PyTorch forward.
    weight_epsilon = jnp.outer(eps_out, eps_in)          # module's buffer
    w_ref = wmu + wsig * weight_epsilon
    b_ref = bmu + bsig * beps
    expected_train = x @ w_ref.T + b_ref
    expected_eval = x @ wmu.T + bmu

    # --- f32 params: training + eval + folded-noise paths -------------------
    p32 = prepare_noisy_linear_params(*raw, param_dtype=jnp.float32)

    out_train = jax.block_until_ready(noisy_linear_forward(x, p32, training=True))
    assert out_train.shape == (batch, out_features)
    assert jnp.allclose(out_train, expected_train, atol=1e-3, rtol=1e-3)

    out_eval = jax.block_until_ready(noisy_linear_forward(x, p32, training=False))
    assert jnp.allclose(out_eval, expected_eval, atol=1e-3, rtol=1e-3)

    p32_folded = fold_noisy_weights(p32)                 # reuse-noise fast path
    out_folded = jax.block_until_ready(
        noisy_linear_forward(x, p32_folded, training=True))
    assert jnp.allclose(out_folded, expected_train, atol=1e-3, rtol=1e-3)

    # --- bf16 weights (half the weight HBM bytes), f32 MXU accumulation -----
    p16 = prepare_noisy_linear_params(*raw, param_dtype=jnp.bfloat16)
    out_bf16 = jax.block_until_ready(noisy_linear_forward(x, p16, training=True))
    assert jnp.allclose(out_bf16, expected_train, atol=5e-2, rtol=5e-2)

    print("KERNEL_OK")
</pallas_src>

<mosaic_0001>
module attributes {stable_mosaic.version = 11 : i64} {
  func.func @_noisy_kernel(%arg0: i32, %arg1: i32, %arg2: memref<8x768xf32, #tpu.memory_space<vmem>>, %arg3: memref<8x768xf32, #tpu.memory_space<vmem>>, %arg4: memref<768x384xf32, #tpu.memory_space<vmem>>, %arg5: memref<768x384xf32, #tpu.memory_space<vmem>>, %arg6: memref<1x384xf32, #tpu.memory_space<vmem>>, %arg7: memref<1x384xf32, #tpu.memory_space<vmem>>, %arg8: memref<8x384xf32, #tpu.memory_space<vmem>>, %arg9: memref<8x384xf32, #tpu.memory_space<vmem>>, %arg10: memref<8x384xf32, #tpu.memory_space<vmem>>) attributes {dimension_semantics = [#tpu.dimension_semantics<parallel>, #tpu.dimension_semantics<arbitrary>], iteration_bounds = array<i64: 2, 2>, scalar_prefetch = 0 : i64, scratch_operands = 2 : i64, tpu.core_type = #tpu.core_type<tc>, window_params = [{transform_indices = @transform_0, window_bounds = array<i64: 8, 768>}, {transform_indices = @transform_1, window_bounds = array<i64: 8, 768>}, {transform_indices = @transform_2, window_bounds = array<i64: 768, 384>}, {transform_indices = @transform_3, window_bounds = array<i64: 768, 384>}, {transform_indices = @transform_4, window_bounds = array<i64: 1, 384>}, {transform_indices = @transform_5, window_bounds = array<i64: 1, 384>}, {transform_indices = @transform_6, window_bounds = array<i64: 8, 384>}]} {
    %c0_i32 = arith.constant 0 : i32
    %0 = arith.cmpi eq, %arg1, %c0_i32 : i32
    %1 = arith.extui %0 : i1 to i32
    %c0_i32_0 = arith.constant 0 : i32
    %2 = arith.cmpi ne, %1, %c0_i32_0 : i32
    scf.if %2 {
      %cst_18 = arith.constant 0.000000e+00 : f32
      %18 = vector.broadcast %cst_18 : f32 to vector<8x384xf32>
      %c0_19 = arith.constant 0 : index
      %c0_20 = arith.constant 0 : index
      %19 = vector.load %arg9[%c0_19, %c0_20] : memref<8x384xf32, #tpu.memory_space<vmem>>, vector<8x384xf32>
      tpu.vector_store %arg9[%c0_19, %c0_20], %18 {strides = array<i32>} : memref<8x384xf32, #tpu.memory_space<vmem>>, vector<8x384xf32>,
      %cst_21 = arith.constant 0.000000e+00 : f32
      %20 = vector.broadcast %cst_21 : f32 to vector<8x384xf32>
      %c0_22 = arith.constant 0 : index
      %c0_23 = arith.constant 0 : index
      %21 = vector.load %arg10[%c0_22, %c0_23] : memref<8x384xf32, #tpu.memory_space<vmem>>, vector<8x384xf32>
      tpu.vector_store %arg10[%c0_22, %c0_23], %20 {strides = array<i32>} : memref<8x384xf32, #tpu.memory_space<vmem>>, vector<8x384xf32>,
    } else {
    }
    %c0 = arith.constant 0 : index
    %c0_1 = arith.constant 0 : index
    %3 = vector.load %arg9[%c0, %c0_1] : memref<8x384xf32, #tpu.memory_space<vmem>>, vector<8x384xf32>
    %c0_2 = arith.constant 0 : index
    %c0_3 = arith.constant 0 : index
    %4 = vector.load %arg2[%c0_2, %c0_3] : memref<8x768xf32, #tpu.memory_space<vmem>>, vector<8x768xf32>
    %c0_4 = arith.constant 0 : index
    %c0_5 = arith.constant 0 : index
    %5 = vector.load %arg4[%c0_4, %c0_5] : memref<768x384xf32, #tpu.memory_space<vmem>>, vector<768x384xf32>
    %cst = arith.constant dense<0.000000e+00> : vector<8x384xf32>
    %6 = tpu.matmul %4, %5, %cst {dimension_numbers = #tpu.dot_dimension_numbers<[1], [0], [0], [1], [0, 0, 1, 1], [], []>} : vector<8x768xf32>, vector<768x384xf32>, vector<8x384xf32> -> vector<8x384xf32>
    %7 = arith.addf %3, %6 : vector<8x384xf32>
    %c0_6 = arith.constant 0 : index
    %c0_7 = arith.constant 0 : index
    %8 = vector.load %arg9[%c0_6, %c0_7] : memref<8x384xf32, #tpu.memory_space<vmem>>, vector<8x384xf32>
    tpu.vector_store %arg9[%c0_6, %c0_7], %7 {strides = array<i32>} : memref<8x384xf32, #tpu.memory_space<vmem>>, vector<8x384xf32>,
    %c0_8 = arith.constant 0 : index
    %c0_9 = arith.constant 0 : index
    %9 = vector.load %arg10[%c0_8, %c0_9] : memref<8x384xf32, #tpu.memory_space<vmem>>, vector<8x384xf32>
    %c0_10 = arith.constant 0 : index
    %c0_11 = arith.constant 0 : index
    %10 = vector.load %arg3[%c0_10, %c0_11] : memref<8x768xf32, #tpu.memory_space<vmem>>, vector<8x768xf32>
    %c0_12 = arith.constant 0 : index
    %c0_13 = arith.constant 0 : index
    %11 = vector.load %arg5[%c0_12, %c0_13] : memref<768x384xf32, #tpu.memory_space<vmem>>, vector<768x384xf32>
    %cst_14 = arith.constant dense<0.000000e+00> : vector<8x384xf32>
    %12 = tpu.matmul %10, %11, %cst_14 {dimension_numbers = #tpu.dot_dimension_numbers<[1], [0], [0], [1], [0, 0, 1, 1], [], []>} : vector<8x768xf32>, vector<768x384xf32>, vector<8x384xf32> -> vector<8x384xf32>
    %13 = arith.addf %9, %12 : vector<8x384xf32>
    %c0_15 = arith.constant 0 : index
    %c0_16 = arith.constant 0 : index
    %14 = vector.load %arg10[%c0_15, %c0_16] : memref<8x384xf32, #tpu.memory_space<vmem>>, vector<8x384xf32>
    tpu.vector_store %arg10[%c0_15, %c0_16], %13 {strides = array<i32>} : memref<8x384xf32, #tpu.memory_space<vmem>>, vector<8x384xf32>,
    %c1_i32 = arith.constant 1 : i32
    %15 = arith.cmpi eq, %arg1, %c1_i32 : i32
    %16 = arith.extui %15 : i1 to i32
    %c0_i32_17 = arith.constant 0 : i32
    %17 = arith.cmpi ne, %16, %c0_i32_17 : i32
    scf.if %17 {
      %c0_18 = arith.constant 0 : index
      %c0_19 = arith.constant 0 : index
      %18 = vector.load %arg9[%c0_18, %c0_19] : memref<8x384xf32, #tpu.memory_space<vmem>>, vector<8x384xf32>
      %c0_20 = arith.constant 0 : index
      %c0_21 = arith.constant 0 : index
      %19 = vector.load %arg10[%c0_20, %c0_21] : memref<8x384xf32, #tpu.memory_space<vmem>>, vector<8x384xf32>
      %c0_22 = arith.constant 0 : index
      %c0_23 = arith.constant 0 : index
      %20 = vector.load %arg6[%c0_22, %c0_23] : memref<1x384xf32, #tpu.memory_space<vmem>>, vector<1x384xf32>
      %21 = vector.broadcast %20 : vector<1x384xf32> to vector<8x384xf32>
      %22 = arith.mulf %19, %21 : vector<8x384xf32>
      %23 = arith.addf %18, %22 : vector<8x384xf32>
      %c0_24 = arith.constant 0 : index
      %c0_25 = arith.constant 0 : index
      %24 = vector.load %arg7[%c0_24, %c0_25] : memref<1x384xf32, #tpu.memory_space<vmem>>, vector<1x384xf32>
      %25 = vector.broadcast %24 : vector<1x384xf32> to vector<8x384xf32>
      %26 = arith.addf %23, %25 : vector<8x384xf32>
      %c0_26 = arith.constant 0 : index
      %c0_27 = arith.constant 0 : index
      %27 = vector.load %arg8[%c0_26, %c0_27] : memref<8x384xf32, #tpu.memory_space<vmem>>, vector<8x384xf32>
      tpu.vector_store %arg8[%c0_26, %c0_27], %26 {strides = array<i32>} : memref<8x384xf32, #tpu.memory_space<vmem>>, vector<8x384xf32>,
    } else {
    }
    return
  }
  func.func @transform_0(%arg0: i32, %arg1: i32) -> (i32, i32) {
    %c0_i32 = arith.constant 0 : i32
    %c0_i32_0 = arith.constant 0 : i32
    return %c0_i32, %arg1 : i32, i32
  }
  func.func @transform_1(%arg0: i32, %arg1: i32) -> (i32, i32) {
    %c0_i32 = arith.constant 0 : i32
    %c0_i32_0 = arith.constant 0 : i32
    return %c0_i32, %arg1 : i32, i32
  }
  func.func @transform_2(%arg0: i32, %arg1: i32) -> (i32, i32) {
    %c0_i32 = arith.constant 0 : i32
    return %arg1, %arg0 : i32, i32
  }
  func.func @transform_3(%arg0: i32, %arg1: i32) -> (i32, i32) {
    %c0_i32 = arith.constant 0 : i32
    return %arg1, %arg0 : i32, i32
  }
  func.func @transform_4(%arg0: i32, %arg1: i32) -> (i32, i32) {
    %c0_i32 = arith.constant 0 : i32
    %c0_i32_0 = arith.constant 0 : i32
    return %c0_i32, %arg0 : i32, i32
  }
  func.func @transform_5(%arg0: i32, %arg1: i32) -> (i32, i32) {
    %c0_i32 = arith.constant 0 : i32
    %c0_i32_0 = arith.constant 0 : i32
    return %c0_i32, %arg0 : i32, i32
  }
  func.func @transform_6(%arg0: i32, %arg1: i32) -> (i32, i32) {
    %c0_i32 = arith.constant 0 : i32
    %c0_i32_0 = arith.constant 0 : i32
    return %c0_i32, %arg0 : i32, i32
  }
}

</mosaic_0001>

<bundles_post_ra>
// kernel: tpu_custom_call.1
= control target key start
LH: loop header
LB: loop body
LE: loop exit
PB: predicated region body
PF: predicated region fallthrough
CT: control target
= control target key end

     0   :  { %s4773_s0 = inlined_call_operand.hbm [shape: f32[8,1536], index: 0, kind: input, shape index: {}]   ;;  %s4774_s1 = inlined_call_operand.hbm [shape: f32[8,1536], index: 1, kind: input, shape index: {}]   ;;  %s4775_s2 = inlined_call_operand.hbm [shape: f32[1536,768], index: 2, kind: input, shape index: {}]   ;;  %s4776_s3 = inlined_call_operand.hbm [shape: f32[1536,768], index: 3, kind: input, shape index: {}]   ;;  %s4777_s4 = inlined_call_operand.hbm [shape: f32[1,768], index: 4, kind: input, shape index: {}]   ;;  %s4778_s5 = inlined_call_operand.hbm [shape: f32[1,768], index: 5, kind: input, shape index: {}]   ;;  %s4779_s6 = inlined_call_operand.hbm [shape: f32[8,768], index: 6, kind: output, shape index: {}]  }
   0x1   :  { %4808 = sst [smem:[#allocation37_spill]] %s4774_s1 }
   0x2   :  { %4809 = sst [smem:[#allocation38_spill]] %s4776_s3 }
   0x3   :  { %4810 = sst [smem:[#allocation39_spill]] %s4777_s4 }
   0x4   :  { %4811 = sst [smem:[#allocation40_spill]] %s4778_s5 }
   0x5   :  { %4812 = sst [smem:[#allocation41_spill]] %s4779_s6 }
   0x6   :  { %11 = vsyncpa [#allocation5], 0 }
   0x7   :  { %13 = vsyncpa [#allocation5 + $0x1], 0 }
   0x8   :  { %14 = vsyncpa [#allocation8], 0 }
   0x9   :  { %16 = vsyncpa [#allocation8 + $0x1], 0 }
   0xa   :  { %17 = vsyncpa [#allocation11], 0 }
   0xb   :  { %19 = vsyncpa [#allocation11 + $0x1], 0 }
   0xc   :  { %20 = vsyncpa [#allocation14], 0 }
   0xd   :  { %22 = vsyncpa [#allocation14 + $0x1], 0 }
   0xe   :  { %23 = vsyncpa [#allocation6], 0 }
   0xf   :  { %25 = vsyncpa [#allocation6 + $0x1], 0  ;;  %s3594_s21 = smov 0   ;;  %s3596_s22 = smov 0  }
  0x10   :  { %s3598_s23 = smov 0   ;;  %s3600_s24 = smov 0  }
  0x11   :  { %s3602_s25 = smov 0   ;;  %s3604_s26 = smov 0  }
  0x12   :  { %s3606_s27 = smov 0   ;;  %s3608_s28 = smov 0  }
  0x13   :  { %s3610_s29 = smov 0   ;;  %s3612_s30 = smov 0  }
  0x14   :  { %s3614_s7 = smov 0   ;;  %s3616_s8 = smov 0  }
  0x15   :  { %s3618_s9 = smov 0   ;;  %s3620_s10 = smov 0  }
  0x16 LB: > { %4813 = sst [smem:[#allocation23_spill]] %s3510_s25  ;;  %s3663_s11 = sadd.s32 4294967295, %s3546_s10   ;;  %s3546_s10 = sphi %s3620_s10, %s31_s10   ;;  %s3542_s9 = sphi %s3618_s9, %s4880_s9   ;;  %s3538_s8 = sphi %s3616_s8, %s4888_s8   ;;  %s3534_s7 = sphi %s3614_s7, %s4878_s7   ;;  %s3530_s30 = sphi %s3612_s30, %s4887_s30   ;;  %s3526_s29 = sphi %s3610_s29, %s4886_s29   ;;  %s3522_s28 = sphi %s3608_s28, %s4885_s28   ;;  %s3518_s27 = sphi %s3606_s27, %s4876_s27   ;;  %s3514_s26 = sphi %s3604_s26, %s4875_s26   ;;  %s3510_s25 = sphi %s3602_s25, %s4874_s25   ;;  %s3506_s24 = sphi %s3600_s24, %s4873_s24   ;;  %s3502_s23 = sphi %s3598_s23, %s4884_s23   ;;  %s3498_s22 = sphi %s3596_s22, %s4883_s22   ;;  %s3494_s21 = sphi %s3594_s21, %s4882_s21  }
  0x17   : > { %4814 = sst [smem:[#allocation24_spill]] %s3514_s26  ;;  %s40_s12 = sadd.s32 1, %s3538_s8 }
  0x18   : > { %4815 = sst [smem:[#allocation25_spill]] %s3522_s28  ;;  %p41_p0 = scmp.ge.s32.totalorder %s40_s12, 2 }
  0x19   : > { %4816 = sst [smem:[#allocation26_spill]] %s3530_s30  ;;  %s43_s13 = sadd.s32 1, %s3542_s9 }
  0x1a   : > { %4817 = sst [smem:[#allocation27_spill]] %s3534_s7  ;;  %s50_s14 = sadd.s32 1, %s3526_s29 }
  0x1b   : > { %4818 = sst [smem:[#allocation28_spill]] %s3542_s9  ;;  %p57_p1 = scmp.ne.s32.totalorder %s3526_s29, %s3522_s28 }
  0x1c   : > { %4819 = sst [smem:[#allocation29_spill]] %s3663_s11  ;;  %s4890_s12 = smov (%p41_p0, %s40_s12), 0 }
  0x1d   : > { %4820 = sst [smem:[#allocation30_spill]] %s4890_s12  ;;  %s4892_s13 = smov (!%p41_p0, %s43_s13), %s3542_s9 }
  0x1e   : > { %s47_s15 = ssub.s32 %s3538_s8, %s4890_s12  ;;  %p4790_p2 = scmp.eq.s32.totalorder %s3546_s10, 0 }
  0x1f   : > { %p45_p3 = scmp.ge.s32.totalorder %s4892_s13, 2  ;;  %p48_p4 = scmp.eq.s32.totalorder %s47_s15, 0 }
  0x20   : > { %p3678_p5 = por %p4790_p2, %p57_p1  ;;  %p63_p6 = scmp.ne.s32.totalorder %s3522_s28, %s3518_s27 }
  0x21   : > { %s4894_s13 = smov (%p45_p3, %s4892_s13), 0  ;;  %p4789_p7 = scmp.eq.s32.totalorder %s3663_s11, 0 }
  0x22   : > { %4822 = sst [smem:[#allocation31_spill]] %s4894_s13  ;;  %s3691_s18 = ssub.s32 %s3542_s9, %s4894_s13 }
  0x23   : > { %s3686_s17 = scalar_select %p48_p4, %s3526_s29, %s50_s14  }
  0x24   : > { %s101_s19 = sor.u32 %s3691_s18, %s47_s15  ;;  %s104_s20 = sadd.s32 1, %s3514_s26 }
  0x25   : > { %4823 = sst [smem:[#allocation32_spill]] %s3686_s17  ;;  %p3697_p8 = por %p4789_p7, %p63_p6 }
  0x26   : > { %p102_p9 = scmp.eq.s32.totalorder %s101_s19, 0  ;;  %p111_p10 = scmp.ne.s32.totalorder %s3514_s26, %s3510_s25 }
  0x27   : > { %s4824_s27 = scalar_select %p3697_p8, 1, 0 }
  0x28   : > { %p117_p11 = scmp.ne.s32.totalorder %s3510_s25, %s3506_s24  ;;  %p3710_p12 = por %p111_p10, %p4790_p2 }
  0x29   : > { %4825 = sst [smem:[#allocation33_spill]] %s4824_s27  ;;  %p4788_p1 = scmp.lt.s32.totalorder %s3546_s10, 4 }
  0x2a   : > { %s3706_s14 = scalar_select %p102_p9, %s3514_s26, %s104_s20  }
  0x2b   : > { %p3716_p13 = por %p117_p11, %p4789_p7  ;;  %s4783_s19 = sand.u32 1, %s3526_s29  }
  0x2c   : > { %4826 = sst [smem:[#allocation34_spill]] %s3706_s14  ;;  %s3725_s12 = smul.u32 48, %s4783_s19 }
  0x2d   : > { %s4828_s15 = scalar_select %p3716_p13, 1, 0 }
  0x2e   : > { %s4784_s20 = smul.u32 768, %s3538_s8  ;;  %p3733_p3 = pnand %p4788_p1, %p3678_p5 }
  0x2f   : > { %4829 = sst [smem:[#allocation35_spill]] %s4828_s15  ;;  %s4831_s1 = sld [smem:[#allocation37_spill]] }
  0x30   : > { %s270_s19 = scalar_lea.vmem [#allocation7], %s3725_s12  ;;  %p3751_p4 = pnand %p4788_p1, %p3710_p12 }
  0x31   : > { %s278_s24 = sshll.u32 %s270_s19, 4  ;;  %s4833_s30 = sand.u32 1, %s3546_s10   ;;  %s3745_s24 = int_to_ptr.vmem [resolvable:$true] %s278_s24 }
  0x32   : > { %s3757_s6 = scalar_lea.sflag [#allocation8], %s4833_s30  ;;  %p4799_p6 = pneg %p3733_p3 }
  0x35   : > { %s3742_s7 = scalar_lea.hbm %s4831_s1, %s4784_s20  ;;  %s3205_s13 = scalar_lea.hbm %s4831_s1, 1536 }
  0x36   : > { %s3200_s14 = scalar_lea.hbm %s3742_s7, 768  ;;  %p3206_p11 = scmp.lt.u32.totalorder %s3742_s7, %s4831_s1 }
  0x37   : > { %p3201_p5 = scmp.ne.s32.totalorder %s3742_s7, %s3200_s14  ;;  %p3207_p12 = scmp.lt.u32.totalorder %s3205_s13, %s3200_s14 }
  0x38   : > { %p3209_p7 = scmp.lt.u32.totalorder %s3200_s14, %s3742_s7 }
  0x39   : > { %p3203_p9 = pnand %p4799_p6, %p3201_p5  ;;  %p3208_p1 = por %p3207_p12, %p3206_p11 }
  0x3b   : > { %p3204_p10 = pneg %p3203_p9  ;;  %p3210_p2 = por %p3209_p7, %p3208_p1 }
  0x3d   : > { %p3211_p0 = pnand %p3210_p2, %p3204_p10 }
  0x3f   : > { %3214 = shalt.err (!%p3211_p0)
}
  0x40   : > { %s3215_s30 = scalar_lea.vmem %s3745_s24, 768  ;;  %s3548_s20 = smov [#allocation7]  }
  0x41   : > { %p3216_p5 = scmp.ne.s32.totalorder %s3745_s24, %s3215_s30  ;;  %s3220_s19 = sshll.u32 %s3548_s20, 4  ;;  %s3221_s19 = int_to_ptr.vmem [resolvable:$false] %s3220_s19 }
  0x42   : > { %s3222_s25 = scalar_lea.vmem %s3221_s19, 1536  ;;  %p3223_p8 = scmp.lt.s32.totalorder %s3745_s24, %s3221_s19 }
  0x43   : > { %p3218_p9 = pnand %p3216_p5, %p4799_p6  ;;  %p3224_p11 = scmp.lt.s32.totalorder %s3222_s25, %s3215_s30 }
  0x45   : > { %p3219_p13 = pneg %p3218_p9  ;;  %p3225_p12 = por %p3224_p11, %p3223_p8 }
  0x47   : > { %p3226_p7 = pnand %p3225_p12, %p3219_p13 }
  0x49   : > { %3229 = shalt.err (!%p3226_p7)
}
  0x4a   : > { %3063 = dma.hbm_to_vmem [thread:$0]  (!%p3733_p3), %s3742_s7, 768, %s3745_s24, %s3757_s6  }
  0x4b   : > { %p2226_p2 = scmp.ge.s32.totalorder %s3546_s10, 1  ;;  %p369_p0 = scmp.lt.s32.totalorder %s3546_s10, 5 }
  0x4c   : > { %s287_s15 = sand.u32 1, %s3514_s26   ;;  %s291_s14 = smul.u32 3, %s3542_s9 }
  0x4d   : > { %p3789_p8 = pnand %p2226_p2, %p369_p0  ;;  %s3793_s30 = smul.u32 2304, %s287_s15 }
  0x4e   : > { %s3081_s20 = smul.u32 576, %s3538_s8  ;;  %s4836_s3 = sld [smem:[#allocation38_spill]] }
  0x4f   : > { %s4834_s13 = scalar_select %p3789_p8, 1, 0 }
  0x50   : > { %s296_s19 = sadd.s32 %s3081_s20, %s291_s14  ;;  %s313_s1 = scalar_lea.vmem [#allocation10], %s3793_s30 }
  0x51   : > { %4835 = sst [smem:[#allocation36_spill]] %s4834_s13  ;;  %s2222_s25 = sshll.u32 %s296_s19, 7 }
  0x52   : > { %s323_s27 = sshll.u32 %s313_s1, 4  ;;  %s3800_s24 = scalar_lea.hbm %s4775_s2, %s2222_s25  ;;  %s3807_s27 = int_to_ptr.vmem [resolvable:$true] %s323_s27 }
  0x53   : > { %s4837_s15 = sand.u32 1, %s3546_s10   ;;  %p4805_p1 = pneg %p3751_p4 }
  0x54   : > { %s3805_s4 = scalar_lea.hbm %s4836_s3, %s2222_s25  ;;  %s3811_s14 = scalar_lea.sflag [#allocation11], %s4837_s15 }
  0x55   : > { %s3230_s1 = scalar_lea.hbm %s3805_s4, 36864  ;;  %s3235_s28 = scalar_lea.hbm %s4836_s3, 147456 }
  0x56   : > { %p3231_p13 = scmp.ne.s32.totalorder %s3805_s4, %s3230_s1  ;;  %p3236_p9 = scmp.lt.u32.totalorder %s3805_s4, %s4836_s3 }
  0x57   : > { %p3237_p11 = scmp.lt.u32.totalorder %s3235_s28, %s3230_s1  ;;  %p3239_p7 = scmp.lt.u32.totalorder %s3230_s1, %s3805_s4 }
  0x58   : > { %p3233_p10 = pnand %p4805_p1, %p3231_p13 }
  0x59   : > { %p3238_p12 = por %p3237_p11, %p3236_p9 }
  0x5a   : > { %p3234_p5 = pneg %p3233_p10 }
  0x5b   : > { %p3240_p2 = por %p3239_p7, %p3238_p12 }
  0x5d   : > { %p3241_p0 = pnand %p3240_p2, %p3234_p5 }
  0x5f   : > { %3244 = shalt.err (!%p3241_p0)
}
  0x60   : > { %s3245_s25 = scalar_lea.vmem %s3807_s27, 36864  ;;  %s3549_s7 = smov [#allocation10]  }
  0x61   : > { %p3246_p13 = scmp.ne.s32.totalorder %s3807_s27, %s3245_s25  ;;  %s3250_s15 = sshll.u32 %s3549_s7, 4  ;;  %s3251_s15 = int_to_ptr.vmem [resolvable:$false] %s3250_s15 }
  0x62   : > { %s3252_s5 = scalar_lea.vmem %s3251_s15, 73728  ;;  %p3253_p8 = scmp.lt.s32.totalorder %s3807_s27, %s3251_s15 }
  0x63   : > { %p3248_p10 = pnand %p3246_p13, %p4805_p1  ;;  %p3254_p9 = scmp.lt.s32.totalorder %s3252_s5, %s3245_s25 }
  0x65   : > { %p3249_p6 = pneg %p3248_p10  ;;  %p3255_p11 = por %p3254_p9, %p3253_p8 }
  0x67   : > { %p3256_p12 = pnand %p3255_p11, %p3249_p6 }
  0x69   : > { %3259 = shalt.err (!%p3256_p12)
}
  0x6a   : > { %s3550_s1 = smov 768   ;;  %s3551_s26 = smov 384  }
  0x6b   : > { %s3552_s28 = smov 24   ;;  %s4838_s20 = smul.u32 768, %s3538_s8 }
  0x6c   : > { %3069 = dma.hbm_to_vmem [thread:$0]  (!%p3751_p4), %s3805_s4, 36864, %s3807_s27, %s3811_s14, %s3550_s1, %s3551_s26, %s3552_s28  }
  0x6d   : > { %s3847_s7 = scalar_lea.hbm %s4773_s0, %s4838_s20  ;;  %s251_s15 = scalar_lea.vmem [#allocation4], %s3725_s12 }
  0x6e   : > { %s259_s5 = sshll.u32 %s251_s15, 4  ;;  %s289_s3 = scalar_lea.vmem [#allocation9], %s3793_s30  ;;  %s3850_s5 = int_to_ptr.vmem [resolvable:$true] %s259_s5 }
  0x6f   : > { %s3853_s13 = sshll.u32 %s289_s3, 4  ;;  %s4839_s9 = sand.u32 1, %s3526_s29   ;;  %s3881_s13 = int_to_ptr.vmem [resolvable:$true] %s3853_s13 }
  0x70   : > { %s248_s11 = scalar_lea.sflag [#allocation5], %s4839_s9  ;;  %s3260_s4 = scalar_lea.hbm %s3847_s7, 768 }
  0x71   : > { %p3261_p6 = scmp.ne.s32.totalorder %s3847_s7, %s3260_s4  ;;  %p4840_p8 = pneg %p3733_p3 }
  0x72   : > { %s3265_s19 = scalar_lea.hbm %s4773_s0, 1536  ;;  %p3266_p2 = scmp.lt.u32.totalorder %s3847_s7, %s4773_s0 }
  0x73   : > { %p3263_p5 = pnand %p3261_p6, %p4840_p8  ;;  %p3267_p0 = scmp.lt.u32.totalorder %s3265_s19, %s3260_s4 }
  0x74   : > { %p3269_p10 = scmp.lt.u32.totalorder %s3260_s4, %s3847_s7 }
  0x75   : > { %p3264_p7 = pneg %p3263_p5  ;;  %p3268_p13 = por %p3267_p0, %p3266_p2 }
  0x77   : > { %p3270_p9 = por %p3269_p10, %p3268_p13 }
  0x79   : > { %p3271_p11 = pnand %p3270_p9, %p3264_p7 }
  0x7b   : > { %3274 = shalt.err (!%p3271_p11)
}
  0x7c   : > { %s3275_s3 = scalar_lea.vmem %s3850_s5, 768  ;;  %p4841_p6 = pmov %p4840_p8 }
  0x7d   : > { %p3276_p12 = scmp.ne.s32.totalorder %s3850_s5, %s3275_s3  ;;  %s3553_s9 = smov [#allocation4]  }
  0x7e   : > { %s3280_s30 = sshll.u32 %s3553_s9, 4  ;;  %s3281_s30 = int_to_ptr.vmem [resolvable:$false] %s3280_s30 }
  0x7f   : > { %p3278_p8 = pnand %p3276_p12, %p4841_p6  ;;  %s3282_s15 = scalar_lea.vmem %s3281_s30, 1536 }
  0x80   : > { %p3283_p1 = scmp.lt.s32.totalorder %s3850_s5, %s3281_s30  ;;  %p3284_p2 = scmp.lt.s32.totalorder %s3282_s15, %s3275_s3 }
  0x81   : > { %p3279_p5 = pneg %p3278_p8 }
  0x82   : > { %p3285_p0 = por %p3284_p2, %p3283_p1 }
  0x84   : > { %p3286_p13 = pnand %p3285_p0, %p3279_p5 }
  0x86   : > { %3289 = shalt.err (!%p3286_p13)
}
  0x87   : > { %3060 = dma.hbm_to_vmem [thread:$0]  (!%p3733_p3), %s3847_s7, 768, %s3850_s5, %s248_s11  }
  0x88   : > { %s3290_s4 = scalar_lea.hbm %s3800_s24, 36864  ;;  %p4842_p10 = pneg %p3751_p4 }
  0x89   : > { %p3291_p7 = scmp.ne.s32.totalorder %s3800_s24, %s3290_s4  ;;  %s3295_s17 = scalar_lea.hbm %s4775_s2, 147456 }
  0x8a   : > { %p3296_p11 = scmp.lt.u32.totalorder %s3800_s24, %s4775_s2  ;;  %p3297_p12 = scmp.lt.u32.totalorder %s3295_s17, %s3290_s4 }
  0x8b   : > { %p3293_p1 = pnand %p3291_p7, %p4842_p10  ;;  %p3299_p8 = scmp.lt.u32.totalorder %s3290_s4, %s3800_s24 }
  0x8c   : > { %p3298_p6 = por %p3297_p12, %p3296_p11 }
  0x8d   : > { %p3294_p9 = pneg %p3293_p1 }
  0x8e   : > { %p3300_p3 = por %p3299_p8, %p3298_p6 }
  0x90   : > { %p3301_p5 = pnand %p3300_p3, %p3294_p9 }
  0x92   : > { %3304 = shalt.err (!%p3301_p5)
}
  0x93   : > { %s3305_s11 = scalar_lea.vmem %s3881_s13, 36864  ;;  %p4843_p0 = pmov %p4842_p10 }
  0x94   : > { %p3306_p2 = scmp.ne.s32.totalorder %s3881_s13, %s3305_s11  ;;  %s3554_s7 = smov [#allocation9]  }
  0x95   : > { %s3310_s5 = sshll.u32 %s3554_s7, 4  ;;  %s3311_s5 = int_to_ptr.vmem [resolvable:$false] %s3310_s5 }
  0x96   : > { %p3308_p13 = pnand %p3306_p2, %p4843_p0  ;;  %s3312_s12 = scalar_lea.vmem %s3311_s5, 73728 }
  0x97   : > { %p3313_p10 = scmp.lt.s32.totalorder %s3881_s13, %s3311_s5  ;;  %p3314_p1 = scmp.lt.s32.totalorder %s3312_s12, %s3305_s11 }
  0x98   : > { %p3309_p7 = pneg %p3308_p13 }
  0x99   : > { %p3315_p11 = por %p3314_p1, %p3313_p10 }
  0x9b   : > { %p3316_p12 = pnand %p3315_p11, %p3309_p7 }
  0x9d   : > { %3319 = shalt.err (!%p3316_p12)
}
  0x9e   : > { %s4844_s3 = sld [smem:[#allocation29_spill]]  ;;  %s4845_s16 = sld [smem:[#allocation28_spill]] }
  0x9f   : > { %3066 = dma.hbm_to_vmem [thread:$0]  (!%p3751_p4), %s3800_s24, 36864, %s3881_s13, %s3757_s6, %s3550_s1, %s3551_s26, %s3552_s28  }
  0xa0   : > { %s2217_s9 = sadd.s32 4294967294, %s3546_s10   ;;  %s158_s30 = sadd.s32 1, %s3502_s23 }
  0xa1   : > { %p165_p9 = scmp.ne.s32.totalorder %s3502_s23, %s3498_s22  ;;  %p4846_p6 = scmp.eq.s32.totalorder %s3691_s18, 0 }
  0xa2   : > { %p4847_p8 = scmp.eq.s32.totalorder %s3546_s10, 0  ;;  %p171_p5 = scmp.ne.s32.totalorder %s3498_s22, %s3494_s21 }
  0xa3   : > { %s3917_s15 = scalar_select %p4846_p6, %s3502_s23, %s158_s30  }
  0xa4   : > { %p167_p3 = por %p165_p9, %p4847_p8  ;;  %p221_p2 = scmp.eq.s32.totalorder %s4844_s3, 3 }
  0xa5   : > { %p227_p0 = scmp.eq.s32.totalorder %s2217_s9, 3  ;;  %p4848_p13 = scmp.eq.s32.totalorder %s4844_s3, 0 }
  0xa6   : > { %s335_s27 = sand.u32 1, %s3502_s23   ;;  %p3931_p10 = por %p221_p2, %p165_p9 }
  0xa7   : > { %p3926_p7 = por %p171_p5, %p4848_p13  ;;  %p3935_p4 = por %p227_p0, %p171_p5 }
  0xa8   : > { %s4850_s6 = scalar_select %p3931_p10, 1, 0 }
  0xa9   : > { %s4849_s4 = scalar_select %p3926_p7, 1, 0 }
  0xaa   : > { %s4851_s13 = scalar_select %p3935_p4, 1, 0 }
  0xab   : > { %s3941_s18 = smul.u32 3, %s335_s27  ;;  %p4852_p1 = scmp.lt.s32.totalorder %s3546_s10, 4 }
  0xac   : > { %s2234_s1 = smul.u32 48, %s4845_s16  ;;  %s4854_s20 = sld [smem:[#allocation39_spill]] }
  0xad   : > { %p3945_p11 = pnand %p4852_p1, %p167_p3  ;;  %s337_s19 = scalar_lea.vmem [#allocation12], %s3941_s18 }
  0xae   : > { %s345_s25 = sshll.u32 %s337_s19, 4  ;;  %s346_s25 = int_to_ptr.vmem [resolvable:$true] %s345_s25 }
  0xaf   : > { %p3322_p9 = pneg %p3945_p11 }
  0xb2   : > { %s3955_s17 = scalar_lea.hbm %s4854_s20, %s2234_s1  ;;  %s3325_s12 = scalar_lea.hbm %s4854_s20, 96 }
  0xb3   : > { %s3320_s11 = scalar_lea.hbm %s3955_s17, 48  ;;  %p3326_p3 = scmp.lt.u32.totalorder %s3955_s17, %s4854_s20 }
  0xb4   : > { %p3321_p12 = scmp.ne.s32.totalorder %s3955_s17, %s3320_s11  ;;  %p3327_p5 = scmp.lt.u32.totalorder %s3325_s12, %s3320_s11 }
  0xb5   : > { %p3329_p0 = scmp.lt.u32.totalorder %s3320_s11, %s3955_s17 }
  0xb6   : > { %p3323_p6 = pnand %p3322_p9, %p3321_p12  ;;  %p3328_p2 = por %p3327_p5, %p3326_p3 }
  0xb8   : > { %p3324_p8 = pneg %p3323_p6  ;;  %p3330_p13 = por %p3329_p0, %p3328_p2 }
  0xba   : > { %p3331_p1 = pnand %p3330_p13, %p3324_p8 }
  0xbc   : > { %3334 = shalt.err (!%p3331_p1)
}
  0xbd   : > { %s3335_s30 = scalar_lea.vmem %s346_s25, 48  ;;  %s3555_s26 = smov [#allocation12]  }
  0xbe   : > { %p3336_p4 = scmp.ne.s32.totalorder %s346_s25, %s3335_s30  ;;  %s3340_s28 = sshll.u32 %s3555_s26, 4  ;;  %s3341_s28 = int_to_ptr.vmem [resolvable:$false] %s3340_s28 }
  0xbf   : > { %s3342_s19 = scalar_lea.vmem %s3341_s28, 96  ;;  %p3343_p10 = scmp.lt.s32.totalorder %s346_s25, %s3341_s28 }
  0xc0   : > { %p3338_p12 = pnand %p3336_p4, %p3322_p9  ;;  %p3344_p7 = scmp.lt.s32.totalorder %s3342_s19, %s3335_s30 }
  0xc2   : > { %p3339_p6 = pneg %p3338_p12  ;;  %p3345_p3 = por %p3344_p7, %p3343_p10 }
  0xc4   : > { %p3346_p5 = pnand %p3345_p3, %p3339_p6 }
  0xc6   : > { %3349 = shalt.err (!%p3346_p5)
}
  0xc7   : > { %3072 = dma.hbm_to_vmem [thread:$0]  (!%p3945_p11), %s3955_s17, 48, %s346_s25, %s3811_s14  }
  0xc8   : > { %s4855_s5 = sld [smem:[#allocation40_spill]]  ;;  %s356_s3 = scalar_lea.vmem [#allocation13], %s3941_s18 }
  0xc9   : > { %s364_s9 = sshll.u32 %s356_s3, 4  ;;  %s353_s30 = scalar_lea.sflag [#allocation14], %s335_s27  ;;  %s365_s9 = int_to_ptr.vmem [resolvable:$true] %s364_s9 }
  0xce   : > { %s3985_s12 = scalar_lea.hbm %s4855_s5, %s2234_s1  ;;  %s3355_s1 = scalar_lea.hbm %s4855_s5, 96 }
  0xcf   : > { %s3350_s26 = scalar_lea.hbm %s3985_s12, 48  ;;  %p3356_p8 = scmp.lt.u32.totalorder %s3985_s12, %s4855_s5 }
  0xd0   : > { %p3351_p7 = scmp.ne.s32.totalorder %s3985_s12, %s3350_s26  ;;  %p3357_p2 = scmp.lt.u32.totalorder %s3355_s1, %s3350_s26 }
  0xd1   : > { %p3359_p13 = scmp.lt.u32.totalorder %s3350_s26, %s3985_s12 }
  0xd2   : > { %p3353_p10 = pnand %p3351_p7, %p3322_p9  ;;  %p3358_p0 = por %p3357_p2, %p3356_p8 }
  0xd4   : > { %p3354_p4 = pneg %p3353_p10  ;;  %p3360_p1 = por %p3359_p13, %p3358_p0 }
  0xd6   : > { %p3361_p12 = pnand %p3360_p1, %p3354_p4 }
  0xd8   : > { %3364 = shalt.err (!%p3361_p12)
}
  0xd9   : > { %s3365_s27 = scalar_lea.vmem %s365_s9, 48  ;;  %s3556_s18 = smov [#allocation13]  }
  0xda   : > { %p3366_p6 = scmp.ne.s32.totalorder %s365_s9, %s3365_s27  ;;  %s3370_s28 = sshll.u32 %s3556_s18, 4  ;;  %s3371_s28 = int_to_ptr.vmem [resolvable:$false] %s3370_s28 }
  0xdb   : > { %s3372_s19 = scalar_lea.vmem %s3371_s28, 96  ;;  %p3373_p7 = scmp.lt.s32.totalorder %s365_s9, %s3371_s28 }
  0xdc   : > { %p3368_p3 = pnand %p3366_p6, %p3322_p9  ;;  %p3374_p10 = scmp.lt.s32.totalorder %s3372_s19, %s3365_s27 }
  0xde   : > { %p3369_p5 = pneg %p3368_p3  ;;  %p3375_p2 = por %p3374_p10, %p3373_p7 }
  0xe0   : > { %p3376_p8 = pnand %p3375_p2, %p3369_p5 }
  0xe2   : > { %3379 = shalt.err (!%p3376_p8)
}
  0xe3   : > { %3075 = dma.hbm_to_vmem [thread:$0]  (!%p3945_p11), %s3985_s12, 48, %s365_s9, %s353_s30  }
  0xe4   : > { %s4856_s11 = sld [smem:[#allocation36_spill]] }
  0xea   : > { %p4857_p4 = scmp.ne.s32.totalorder %s4856_s11, 0 }
  0xeb   : > { %s4858_s7 = sld [smem:[#allocation25_spill]] (!%p4857_p4)  ;;  %s4859_s3 = sld [smem:[#allocation33_spill]] (!%p4857_p4) }
  0xec   : > { %373 = sbr.rel (%p4857_p4) target bundleno = 841 (0x349), region = 44 }
  0xf1   : > { %s375_s26 = sand.u32 (!%p4857_p4), 1, %s4858_s7   ;;  %p4860_p9 = scmp.ne.s32.totalorder (!%p4857_p4), %s4859_s3, 0 }
  0xf2   : > { %s3039_s14 = smul.u32 (!%p4857_p4), 48, %s375_s26  ;;  %s376_s16 = scalar_lea.sflag (!%p4857_p4), [#allocation5], %s375_s26 }
  0xf4   : > { %s4012_s1 = scalar_lea.vmem [#allocation4], %s3039_s14 }
  0xf5   : > { %3465 = dma.done.wait (%p4860_p9), %s376_s16, 768  }
  0xf6   : > { %3467 = vsyncadd (%p4860_p9), %s376_s16, 4294966528  ;;  %s4861_s17 = sld [smem:[#allocation29_spill]]  ;;  %s4019_s12 = scalar_lea.vmem [#allocation7], %s3039_s14 }
  0xfc   : > { %s384_s24 = sand.u32 1, %s4861_s17  }
  0xfd   : > { %s385_s25 = scalar_lea.sflag [#allocation8], %s384_s24 }
  0xfe   : > { %3469 = dma.done.wait (%p4860_p9), %s385_s25, 768  }
  0xff   : > { %3471 = vsyncadd (%p4860_p9), %s385_s25, 4294966528  ;;  %s4862_s9 = sld [smem:[#allocation23_spill]]  ;;  %s4863_s30 = sld [smem:[#allocation35_spill]] }
 0x105   : > { %s395_s27 = sand.u32 1, %s4862_s9   ;;  %p4864_p11 = scmp.ne.s32.totalorder %s4863_s30, 0 }
 0x106   : > { %s3040_s18 = smul.u32 2304, %s395_s27 }
 0x108   : > { %s4026_s28 = scalar_lea.vmem [#allocation9], %s3040_s18 }
 0x109   : > { %3473 = dma.done.wait (%p4864_p11), %s385_s25, 36864  }
 0x10a   : > { %3475 = vsyncadd (%p4864_p11), %s385_s25, 4294930432  ;;  %s403_s19 = scalar_lea.sflag [#allocation11], %s384_s24  ;;  %s4032_s11 = scalar_lea.vmem [#allocation10], %s3040_s18 }
 0x10b   : > { %3477 = dma.done.wait (%p4864_p11), %s403_s19, 36864  }
 0x10c   : > { %3479 = vsyncadd (%p4864_p11), %s403_s19, 4294930432  ;;  %s4039_s7 = sand.u32 1, %s3498_s22   ;;  %p4865_p0 = scmp.ne.s32.totalorder %s4849_s4, 0 }
 0x10d   : > { %s3041_s3 = smul.u32 3, %s4039_s7 }
 0x10f   : > { %s4042_s26 = scalar_lea.vmem [#allocation12], %s3041_s3 }
 0x110   : > { %3481 = dma.done.wait (%p4865_p0), %s403_s19, 48  }
 0x111   : > { %3483 = vsyncadd (%p4865_p0), %s403_s19, 4294967248  ;;  %s421_s14 = scalar_lea.sflag [#allocation14], %s4039_s7  ;;  %s4049_s16 = scalar_lea.vmem [#allocation13], %s3041_s3 }
 0x112   : > { %3485 = dma.done.wait (%p4865_p0), %s421_s14, 48  }
 0x113   : > { %3487 = vsyncadd (%p4865_p0), %s421_s14, 4294967248  ;;  %s3042_s17 = smul.u32 24, %s4039_s7  ;;  %s4866_s25 = sld [smem:[#allocation26_spill]] }
 0x115   : > { %s4056_s24 = scalar_lea.vmem [#allocation15], %s3042_s17 }
 0x119   : > { %p2227_p13 = scmp.ne.s32.totalorder %s4866_s25, 0 }
 0x11a   : > { %v3557_v0 = vmov (!%p2227_p13), 0.0  }
 0x11b   : > { %490 = sbr.rel (%p2227_p13) target bundleno = 290 (0x122), region = 72  ;;  %491 = vst [vmem:[#allocation2] sm:$0xff] (!%p2227_p13), %v3557_v0  ;;  %492 = vst [vmem:[#allocation2 + $0x8] sm:$0xff] (!%p2227_p13), %v3557_v0 }
 0x11c   : > { %493 = vst [vmem:[#allocation2 + $0x10] sm:$0xff] (!%p2227_p13), %v3557_v0  ;;  %494 = vst [vmem:[#allocation3] sm:$0xff] (!%p2227_p13), %v3557_v0 }
 0x11d   : > { %495 = vst [vmem:[#allocation3 + $0x8] sm:$0xff] (!%p2227_p13), %v3557_v0  ;;  %496 = vst [vmem:[#allocation3 + $0x10] sm:$0xff] (!%p2227_p13), %v3557_v0 }
 0x122 PF: > { %v507_v1 = vld [vmem:[%s4026_s28 + $0x8] sm:$0xff]  ;;  %v510_v2 = vld [vmem:[%s4026_s28 + $0x20] sm:$0xff]  ;;  %v556_v3 = vld [vmem:[%s4026_s28 + $0x190] sm:$0xff]  ;;  %s4867_s4 = sld [smem:[#allocation26_spill]] }
 0x123   : > { %v2447_v4 = vpack.c.bf16 %v510_v2, %v507_v1  ;;  %v559_v5 = vld [vmem:[%s4026_s28 + $0x1a8] sm:$0xff]  ;;  %v506_v6 = vld [vmem:[%s4026_s28] sm:$0xff]  ;;  %v509_v7 = vld [vmem:[%s4026_s28 + $0x18] sm:$0xff] }
 0x124   : > { %v2639_v8 = vpack.c.bf16 %v559_v5, %v556_v3  ;;  %v2449_v9 = vpack.c.bf16 %v509_v7, %v506_v6  ;;  %v508_v10 = vld [vmem:[%s4026_s28 + $0x10] sm:$0xff]  ;;  %v511_v11 = vld [vmem:[%s4026_s28 + $0x28] sm:$0xff]  ;;  %v513_v12 = vld [vmem:[%s4026_s28 + $0x38] sm:$0xff] }
 0x125   : > { %2448 = vmatprep.subr.bf16.mxu0 %v2447_v4  ;;  %v2641_v13 = vpack.c.bf16 %v511_v11, %v508_v10  ;;  %v516_v14 = vld [vmem:[%s4026_s28 + $0x50] sm:$0xff]  ;;  %v562_v15 = vld [vmem:[%s4026_s28 + $0x1c0] sm:$0xff]  ;;  %v565_v16 = vld [vmem:[%s4026_s28 + $0x1d8] sm:$0xff] }
 0x126   : > { %2640 = vmatprep.subr.bf16.mxu1 %v2639_v8  ;;  %2450 = vmatpush1.bf16.msra.mxu0 %v2449_v9  ;;  %v2451_v17 = vpack.c.bf16 %v516_v14, %v513_v12  ;;  %v2643_v18 = vpack.c.bf16 %v565_v16, %v562_v15  ;;  %v512_v19 = vld [vmem:[%s4026_s28 + $0x30] sm:$0xff]  ;;  %v515_v20 = vld [vmem:[%s4026_s28 + $0x48] sm:$0xff]  ;;  %v514_v21 = vld [vmem:[%s4026_s28 + $0x40] sm:$0xff] }
 0x127   : > { %2642 = vmatpush3.bf16.msra.mxu1 %v2641_v13  ;;  %v2453_v22 = vpack.c.bf16 %v515_v20, %v512_v19  ;;  %v517_v23 = vld [vmem:[%s4026_s28 + $0x58] sm:$0xff]  ;;  %v519_v24 = vld [vmem:[%s4026_s28 + $0x68] sm:$0xff]  ;;  %v522_v25 = vld [vmem:[%s4026_s28 + $0x80] sm:$0xff] }
 0x128   : > { %2452 = vmatprep.subr.bf16.mxu0 %v2451_v17  ;;  %2644 = vmatprep.subr.bf16.mxu1 %v2643_v18  ;;  %v2645_v26 = vpack.c.bf16 %v517_v23, %v514_v21  ;;  %v2455_v27 = vpack.c.bf16 %v522_v25, %v519_v24  ;;  %v568_v28 = vld [vmem:[%s4026_s28 + $0x1f0] sm:$0xff]  ;;  %v571_v29 = vld [vmem:[%s4026_s28 + $0x208] sm:$0xff]  ;;  %v518_v30 = vld [vmem:[%s4026_s28 + $0x60] sm:$0xff]  ;;  %p2228_p1 = scmp.ne.s32.totalorder %s4867_s4, 1 }
 0x129   : > { %v2647_v31 = vpack.c.bf16 %v571_v29, %v568_v28  ;;  %v521_v32 = vld [vmem:[%s4026_s28 + $0x78] sm:$0xff]  ;;  %v520_v33 = vld [vmem:[%s4026_s28 + $0x70] sm:$0xff]  ;;  %v523_v34 = vld [vmem:[%s4026_s28 + $0x88] sm:$0xff] }
 0x12a   : > { %2454 = vmatpush1.bf16.msra.mxu0 %v2453_v22  ;;  %v2457_v35 = vpack.c.bf16 %v521_v32, %v518_v30  ;;  %v525_v36 = vld [vmem:[%s4026_s28 + $0x98] sm:$0xff]  ;;  %v528_v37 = vld [vmem:[%s4026_s28 + $0xb0] sm:$0xff]  ;;  %v574_v38 = vld [vmem:[%s4026_s28 + $0x220] sm:$0xff]  ;;  %v2649_v39 = vpack.c.bf16 %v523_v34, %v520_v33 }
 0x12b   : > { %2646 = vmatpush3.bf16.msra.mxu1 %v2645_v26  ;;  %2456 = vmatprep.subr.bf16.mxu0 %v2455_v27  ;;  %v2459_v40 = vpack.c.bf16 %v528_v37, %v525_v36  ;;  %v577_v41 = vld [vmem:[%s4026_s28 + $0x238] sm:$0xff]  ;;  %v524_v42 = vld [vmem:[%s4026_s28 + $0x90] sm:$0xff]  ;;  %v527_v43 = vld [vmem:[%s4026_s28 + $0xa8] sm:$0xff] }
 0x12c   : > { %2648 = vmatprep.subr.bf16.mxu1 %v2647_v31  ;;  %v2651_v44 = vpack.c.bf16 %v577_v41, %v574_v38  ;;  %v526_v45 = vld [vmem:[%s4026_s28 + $0xa0] sm:$0xff]  ;;  %v529_v46 = vld [vmem:[%s4026_s28 + $0xb8] sm:$0xff]  ;;  %v531_v47 = vld [vmem:[%s4026_s28 + $0xc8] sm:$0xff]  ;;  %v2461_v51 = vpack.c.bf16 %v527_v43, %v524_v42 }
 0x12d   : > { %v534_v48 = vld [vmem:[%s4026_s28 + $0xe0] sm:$0xff]  ;;  %v580_v49 = vld [vmem:[%s4026_s28 + $0x250] sm:$0xff]  ;;  %v583_v50 = vld [vmem:[%s4026_s28 + $0x268] sm:$0xff]  ;;  %v2653_v52 = vpack.c.bf16 %v529_v46, %v526_v45 }
 0x12e   : > { %2458 = vmatpush1.bf16.msra.mxu0 %v2457_v35  ;;  %v2463_v53 = vpack.c.bf16 %v534_v48, %v531_v47  ;;  %v530_v54 = vld [vmem:[%s4026_s28 + $0xc0] sm:$0xff]  ;;  %v533_v55 = vld [vmem:[%s4026_s28 + $0xd8] sm:$0xff]  ;;  %v532_v56 = vld [vmem:[%s4026_s28 + $0xd0] sm:$0xff]  ;;  %v2655_v57 = vpack.c.bf16 %v583_v50, %v580_v49 }
 0x12f   : > { %2650 = vmatpush3.bf16.msra.mxu1 %v2649_v39  ;;  %2460 = vmatprep.subr.bf16.mxu0 %v2459_v40  ;;  %v535_v58 = vld [vmem:[%s4026_s28 + $0xe8] sm:$0xff]  ;;  %v537_v59 = vld [vmem:[%s4026_s28 + $0xf8] sm:$0xff]  ;;  %v540_v60 = vld [vmem:[%s4026_s28 + $0x110] sm:$0xff]  ;;  %v2465_v63 = vpack.c.bf16 %v533_v55, %v530_v54 }
 0x130   : > { %2652 = vmatprep.subr.bf16.mxu1 %v2651_v44  ;;  %v586_v61 = vld [vmem:[%s4026_s28 + $0x280] sm:$0xff]  ;;  %v589_v62 = vld [vmem:[%s4026_s28 + $0x298] sm:$0xff]  ;;  %v2657_v0 = vpack.c.bf16 %v535_v58, %v532_v56  ;;  %v2467_v1 = vpack.c.bf16 %v540_v60, %v537_v59  ;;  %v536_v2 = vld [vmem:[%s4026_s28 + $0xf0] sm:$0xff] }
 0x131   : > { %v539_v3 = vld [vmem:[%s4026_s28 + $0x108] sm:$0xff]  ;;  %v538_v4 = vld [vmem:[%s4026_s28 + $0x100] sm:$0xff]  ;;  %v2659_v5 = vpack.c.bf16 %v589_v62, %v586_v61  ;;  %v541_v6 = vld [vmem:[%s4026_s28 + $0x118] sm:$0xff] }
 0x132   : > { %2462 = vmatpush1.bf16.msra.mxu0 %v2461_v51  ;;  %v543_v7 = vld [vmem:[%s4026_s28 + $0x128] sm:$0xff]  ;;  %v546_v8 = vld [vmem:[%s4026_s28 + $0x140] sm:$0xff]  ;;  %v592_v9 = vld [vmem:[%s4026_s28 + $0x2b0] sm:$0xff]  ;;  %v2469_v11 = vpack.c.bf16 %v539_v3, %v536_v2  ;;  %v2661_v13 = vpack.c.bf16 %v541_v6, %v538_v4 }
 0x133   : > { %2654 = vmatpush3.bf16.msra.mxu1 %v2653_v52  ;;  %2464 = vmatprep.subr.bf16.mxu0 %v2463_v53  ;;  %v595_v10 = vld [vmem:[%s4026_s28 + $0x2c8] sm:$0xff]  ;;  %v542_v12 = vld [vmem:[%s4026_s28 + $0x120] sm:$0xff]  ;;  %v2471_v14 = vpack.c.bf16 %v546_v8, %v543_v7  ;;  %v545_v15 = vld [vmem:[%s4026_s28 + $0x138] sm:$0xff] }
 0x134   : > { %2656 = vmatprep.subr.bf16.mxu1 %v2655_v57  ;;  %v544_v16 = vld [vmem:[%s4026_s28 + $0x130] sm:$0xff]  ;;  %v547_v17 = vld [vmem:[%s4026_s28 + $0x148] sm:$0xff]  ;;  %v2663_v18 = vpack.c.bf16 %v595_v10, %v592_v9  ;;  %v549_v19 = vld [vmem:[%s4026_s28 + $0x158] sm:$0xff]  ;;  %v2473_v24 = vpack.c.bf16 %v545_v15, %v542_v12 }
 0x135   : > { %v552_v20 = vld [vmem:[%s4026_s28 + $0x170] sm:$0xff]  ;;  %v501_v21 = vld [vmem:[%s4012_s1 + $0x8] sm:$0xff]  ;;  %v598_v22 = vld [vmem:[%s4026_s28 + $0x2e0] sm:$0xff]  ;;  %v2665_v25 = vpack.c.bf16 %v547_v17, %v544_v16 }
 0x136   : > { %2466 = vmatpush1.bf16.msra.mxu0 %v2465_v63  ;;  %v601_v23 = vld [vmem:[%s4026_s28 + $0x2f8] sm:$0xff]  ;;  %1071 = vmatprep.mubr.f32.mxu1 %v501_v21  ;;  %v2475_v26 = vpack.c.bf16 %v552_v20, %v549_v19  ;;  %v548_v27 = vld [vmem:[%s4026_s28 + $0x150] sm:$0xff]  ;;  %v551_v28 = vld [vmem:[%s4026_s28 + $0x168] sm:$0xff] }
 0x137   : > { %2658 = vmatpush3.bf16.msra.mxu1 %v2657_v0  ;;  %2468 = vmatprep.subr.bf16.mxu0 %v2467_v1  ;;  %v550_v29 = vld [vmem:[%s4026_s28 + $0x160] sm:$0xff]  ;;  %v2667_v30 = vpack.c.bf16 %v601_v23, %v598_v22  ;;  %v553_v31 = vld [vmem:[%s4026_s28 + $0x178] sm:$0xff]  ;;  %v555_v32 = vld [vmem:[%s4026_s28 + $0x188] sm:$0xff]  ;;  %v2477_v36 = vpack.c.bf16 %v551_v28, %v548_v27 }
 0x138   : > { %2660 = vmatprep.subr.bf16.mxu1 %v2659_v5  ;;  %858 = vmatprep.mubr.f32.mxu0 %v501_v21  ;;  %v558_v33 = vld [vmem:[%s4026_s28 + $0x1a0] sm:$0xff]  ;;  %v652_v34 = vld [vmem:[%s4026_s28 + $0x490] sm:$0xff]  ;;  %v655_v35 = vld [vmem:[%s4026_s28 + $0x4a8] sm:$0xff]  ;;  %v2669_v37 = vpack.c.bf16 %v553_v31, %v550_v29 }
 0x139   : > { %v2479_v38 = vpack.c.bf16 %v558_v33, %v555_v32  ;;  %v554_v39 = vld [vmem:[%s4026_s28 + $0x180] sm:$0xff]  ;;  %v557_v40 = vld [vmem:[%s4026_s28 + $0x198] sm:$0xff]  ;;  %v604_v41 = vld [vmem:[%s4026_s28 + $0x310] sm:$0xff]  ;;  %v2671_v42 = vpack.c.bf16 %v655_v35, %v652_v34 }
 0x13a   : > { %2470 = vmatpush1.bf16.msra.mxu0 %v2469_v11  ;;  %v607_v43 = vld [vmem:[%s4026_s28 + $0x328] sm:$0xff]  ;;  %v561_v44 = vld [vmem:[%s4026_s28 + $0x1b8] sm:$0xff]  ;;  %v564_v45 = vld [vmem:[%s4026_s28 + $0x1d0] sm:$0xff]  ;;  %v2481_v48 = vpack.c.bf16 %v557_v40, %v554_v39 }
 0x13b   : > { %2662 = vmatpush3.bf16.msra.mxu1 %v2661_v13  ;;  %2472 = vmatprep.subr.bf16.mxu0 %v2471_v14  ;;  %v658_v46 = vld [vmem:[%s4026_s28 + $0x4c0] sm:$0xff]  ;;  %v661_v47 = vld [vmem:[%s4026_s28 + $0x4d8] sm:$0xff]  ;;  %v2673_v50 = vpack.c.bf16 %v607_v43, %v604_v41  ;;  %v2483_v51 = vpack.c.bf16 %v564_v45, %v561_v44  ;;  %v560_v52 = vld [vmem:[%s4026_s28 + $0x1b0] sm:$0xff] }
 0x13c   : > { %2664 = vmatprep.subr.bf16.mxu1 %v2663_v18  ;;  %v4137_v49 = vld [vmem:[%s4012_s1] sm:$0xff]  ;;  %v563_v53 = vld [vmem:[%s4026_s28 + $0x1c8] sm:$0xff]  ;;  %v2675_v55 = vpack.c.bf16 %v661_v47, %v658_v46  ;;  %v613_v56 = vld [vmem:[%s4026_s28 + $0x358] sm:$0xff] }
 0x13d   : > { %v610_v54 = vld [vmem:[%s4026_s28 + $0x340] sm:$0xff]  ;;  %v567_v57 = vld [vmem:[%s4026_s28 + $0x1e8] sm:$0xff]  ;;  %v664_v59 = vld [vmem:[%s4026_s28 + $0x4f0] sm:$0xff]  ;;  %v2485_v61 = vpack.c.bf16 %v563_v53, %v560_v52 }
 0x13e   : > { %2474 = vmatpush1.bf16.msra.mxu0 %v2473_v24  ;;  %v570_v58 = vld [vmem:[%s4026_s28 + $0x200] sm:$0xff]  ;;  %v667_v60 = vld [vmem:[%s4026_s28 + $0x508] sm:$0xff]  ;;  %v2677_v62 = vpack.c.bf16 %v613_v56, %v610_v54  ;;  %v569_v1 = vld [vmem:[%s4026_s28 + $0x1f8] sm:$0xff] }
 0x13f   : > { %2666 = vmatpush3.bf16.msra.mxu1 %v2665_v25  ;;  %2476 = vmatprep.subr.bf16.mxu0 %v2475_v26  ;;  %v2487_v63 = vpack.c.bf16 %v570_v58, %v567_v57  ;;  %v566_v0 = vld [vmem:[%s4026_s28 + $0x1e0] sm:$0xff]  ;;  %v616_v2 = vld [vmem:[%s4026_s28 + $0x370] sm:$0xff]  ;;  %v2679_v3 = vpack.c.bf16 %v667_v60, %v664_v59  ;;  %v619_v4 = vld [vmem:[%s4026_s28 + $0x388] sm:$0xff] }
 0x140   : > { %2668 = vmatprep.subr.bf16.mxu1 %v2667_v30  ;;  %v573_v5 = vld [vmem:[%s4026_s28 + $0x218] sm:$0xff]  ;;  %v576_v6 = vld [vmem:[%s4026_s28 + $0x230] sm:$0xff]  ;;  %v670_v7 = vld [vmem:[%s4026_s28 + $0x520] sm:$0xff]  ;;  %v2489_v9 = vpack.c.bf16 %v569_v1, %v566_v0  ;;  %v2681_v10 = vpack.c.bf16 %v619_v4, %v616_v2 }
 0x141   : > { %v673_v8 = vld [vmem:[%s4026_s28 + $0x538] sm:$0xff]  ;;  %v2491_v11 = vpack.c.bf16 %v576_v6, %v573_v5  ;;  %v572_v12 = vld [vmem:[%s4026_s28 + $0x210] sm:$0xff]  ;;  %v575_v13 = vld [vmem:[%s4026_s28 + $0x228] sm:$0xff] }
 0x142   : > { %2478 = vmatpush1.bf16.msra.mxu0 %v2477_v36  ;;  %v622_v14 = vld [vmem:[%s4026_s28 + $0x3a0] sm:$0xff]  ;;  %v2683_v15 = vpack.c.bf16 %v673_v8, %v670_v7  ;;  %v625_v16 = vld [vmem:[%s4026_s28 + $0x3b8] sm:$0xff]  ;;  %v579_v17 = vld [vmem:[%s4026_s28 + $0x248] sm:$0xff]  ;;  %v2493_v22 = vpack.c.bf16 %v575_v13, %v572_v12 }
 0x143   : > { %2670 = vmatpush3.bf16.msra.mxu1 %v2669_v37  ;;  %2480 = vmatprep.subr.bf16.mxu0 %v2479_v38  ;;  %v582_v18 = vld [vmem:[%s4026_s28 + $0x260] sm:$0xff]  ;;  %v676_v19 = vld [vmem:[%s4026_s28 + $0x550] sm:$0xff]  ;;  %v679_v20 = vld [vmem:[%s4026_s28 + $0x568] sm:$0xff]  ;;  %v2685_v23 = vpack.c.bf16 %v625_v16, %v622_v14 }
 0x144   : > { %2672 = vmatprep.subr.bf16.mxu1 %v2671_v42  ;;  %v4165_v21 = vld [vmem:[%s4012_s1 + $0x18] sm:$0xff]  ;;  %v2495_v24 = vpack.c.bf16 %v582_v18, %v579_v17  ;;  %v578_v25 = vld [vmem:[%s4026_s28 + $0x240] sm:$0xff]  ;;  %v628_v27 = vld [vmem:[%s4026_s28 + $0x3d0] sm:$0xff]  ;;  %v2687_v28 = vpack.c.bf16 %v679_v20, %v676_v19 }
 0x145   : > { %v581_v26 = vld [vmem:[%s4026_s28 + $0x258] sm:$0xff]  ;;  %v631_v29 = vld [vmem:[%s4026_s28 + $0x3e8] sm:$0xff]  ;;  %v588_v31 = vld [vmem:[%s4026_s28 + $0x290] sm:$0xff] }
 0x146   : > { %2482 = vmatpush1.bf16.msra.mxu0 %v2481_v48  ;;  %1072 = vmatmul.mubr.f32.vlgmr.msra.gmra.mrb[0].mxu1 %v4137_v49  ;;  %v585_v30 = vld [vmem:[%s4026_s28 + $0x278] sm:$0xff]  ;;  %v682_v32 = vld [vmem:[%s4026_s28 + $0x580] sm:$0xff]  ;;  %v2497_v34 = vpack.c.bf16 %v581_v26, %v578_v25  ;;  %v2689_v35 = vpack.c.bf16 %v631_v29, %v628_v27  ;;  %v584_v37 = vld [vmem:[%s4026_s28 + $0x270] sm:$0xff] }
 0x147   : > { %2674 = vmatpush3.bf16.msra.mxu1 %v2673_v50  ;;  %2484 = vmatprep.subr.bf16.mxu0 %v2483_v51  ;;  %v685_v33 = vld [vmem:[%s4026_s28 + $0x598] sm:$0xff]  ;;  %v2499_v36 = vpack.c.bf16 %v588_v31, %v585_v30  ;;  %v587_v38 = vld [vmem:[%s4026_s28 + $0x288] sm:$0xff]  ;;  %v634_v39 = vld [vmem:[%s4026_s28 + $0x400] sm:$0xff] }
 0x148   : > { %2676 = vmatprep.subr.bf16.mxu1 %v2675_v55  ;;  %1141 = vmatprep.mubr.f32.mxu1 %v4165_v21  ;;  %v2691_v40 = vpack.c.bf16 %v685_v33, %v682_v32  ;;  %v637_v41 = vld [vmem:[%s4026_s28 + $0x418] sm:$0xff]  ;;  %v591_v42 = vld [vmem:[%s4026_s28 + $0x2a8] sm:$0xff]  ;;  %v594_v43 = vld [vmem:[%s4026_s28 + $0x2c0] sm:$0xff]  ;;  %v2501_v46 = vpack.c.bf16 %v587_v38, %v584_v37 }
 0x149   : > { %v688_v44 = vld [vmem:[%s4026_s28 + $0x5b0] sm:$0xff]  ;;  %v691_v45 = vld [vmem:[%s4026_s28 + $0x5c8] sm:$0xff]  ;;  %v2693_v47 = vpack.c.bf16 %v637_v41, %v634_v39  ;;  %v2503_v48 = vpack.c.bf16 %v594_v43, %v591_v42  ;;  %v590_v50 = vld [vmem:[%s4026_s28 + $0x2a0] sm:$0xff] }
 0x14a   : > { %2486 = vmatpush1.bf16.msra.mxu0 %v2485_v61  ;;  %v593_v51 = vld [vmem:[%s4026_s28 + $0x2b8] sm:$0xff]  ;;  %v640_v52 = vld [vmem:[%s4026_s28 + $0x430] sm:$0xff]  ;;  %v2695_v53 = vpack.c.bf16 %v691_v45, %v688_v44  ;;  %v643_v54 = vld [vmem:[%s4026_s28 + $0x448] sm:$0xff] }
 0x14b   : > { %2678 = vmatpush3.bf16.msra.mxu1 %v2677_v62  ;;  %2488 = vmatprep.subr.bf16.mxu0 %v2487_v63  ;;  %v597_v55 = vld [vmem:[%s4026_s28 + $0x2d8] sm:$0xff]  ;;  %v600_v56 = vld [vmem:[%s4026_s28 + $0x2f0] sm:$0xff]  ;;  %v694_v57 = vld [vmem:[%s4026_s28 + $0x5e0] sm:$0xff]  ;;  %v2505_v59 = vpack.c.bf16 %v593_v51, %v590_v50  ;;  %v2697_v60 = vpack.c.bf16 %v643_v54, %v640_v52 }
 0x14c   : > { %2680 = vmatprep.subr.bf16.mxu1 %v2679_v3  ;;  %v697_v58 = vld [vmem:[%s4026_s28 + $0x5f8] sm:$0xff]  ;;  %v2507_v61 = vpack.c.bf16 %v600_v56, %v597_v55  ;;  %v596_v62 = vld [vmem:[%s4026_s28 + $0x2d0] sm:$0xff]  ;;  %v599_v63 = vld [vmem:[%s4026_s28 + $0x2e8] sm:$0xff] }
 0x14d   : > { %v646_v0 = vld [vmem:[%s4026_s28 + $0x460] sm:$0xff]  ;;  %v2699_v1 = vpack.c.bf16 %v697_v58, %v694_v57  ;;  %v649_v2 = vld [vmem:[%s4026_s28 + $0x478] sm:$0xff]  ;;  %v603_v3 = vld [vmem:[%s4026_s28 + $0x308] sm:$0xff]  ;;  %v2509_v7 = vpack.c.bf16 %v599_v63, %v596_v62 }
 0x14e   : > { %2490 = vmatpush1.bf16.msra.mxu0 %v2489_v9  ;;  %v606_v4 = vld [vmem:[%s4026_s28 + $0x320] sm:$0xff]  ;;  %v748_v5 = vld [vmem:[%s4026_s28 + $0x790] sm:$0xff]  ;;  %v751_v6 = vld [vmem:[%s4026_s28 + $0x7a8] sm:$0xff]  ;;  %v2701_v8 = vpack.c.bf16 %v649_v2, %v646_v0 }
 0x14f   : > { %2682 = vmatpush3.bf16.msra.mxu1 %v2681_v10  ;;  %2492 = vmatprep.subr.bf16.mxu0 %v2491_v11  ;;  %v2511_v9 = vpack.c.bf16 %v606_v4, %v603_v3  ;;  %v602_v10 = vld [vmem:[%s4026_s28 + $0x300] sm:$0xff]  ;;  %v605_v11 = vld [vmem:[%s4026_s28 + $0x318] sm:$0xff]  ;;  %v700_v12 = vld [vmem:[%s4026_s28 + $0x610] sm:$0xff]  ;;  %v2703_v13 = vpack.c.bf16 %v751_v6, %v748_v5 }
 0x150   : > { %2684 = vmatprep.subr.bf16.mxu1 %v2683_v15  ;;  %v703_v14 = vld [vmem:[%s4026_s28 + $0x628] sm:$0xff]  ;;  %v609_v15 = vld [vmem:[%s4026_s28 + $0x338] sm:$0xff]  ;;  %v612_v16 = vld [vmem:[%s4026_s28 + $0x350] sm:$0xff]  ;;  %v2513_v20 = vpack.c.bf16 %v605_v11, %v602_v10 }
 0x151   : > { %v754_v17 = vld [vmem:[%s4026_s28 + $0x7c0] sm:$0xff]  ;;  %v757_v18 = vld [vmem:[%s4026_s28 + $0x7d8] sm:$0xff]  ;;  %v611_v25 = vld [vmem:[%s4026_s28 + $0x348] sm:$0xff] }
 0x152   : > { %2494 = vmatpush1.bf16.msra.mxu0 %v2493_v22  ;;  %v4209_v19 = vld [vmem:[%s4012_s1 + $0x10] sm:$0xff]  ;;  %v2705_v22 = vpack.c.bf16 %v703_v14, %v700_v12  ;;  %v2707_v27 = vpack.c.bf16 %v757_v18, %v754_v17  ;;  %v615_v29 = vld [vmem:[%s4026_s28 + $0x368] sm:$0xff]  ;;  %v617_v38 = vld [vmem:[%s4026_s28 + $0x378] sm:$0xff] }
 0x153   : > { %2686 = vmatpush3.bf16.msra.mxu1 %v2685_v23  ;;  %2496 = vmatprep.subr.bf16.mxu0 %v2495_v24  ;;  %v2515_v23 = vpack.c.bf16 %v612_v16, %v609_v15  ;;  %v608_v24 = vld [vmem:[%s4026_s28 + $0x330] sm:$0xff]  ;;  %v706_v26 = vld [vmem:[%s4026_s28 + $0x640] sm:$0xff]  ;;  %v763_v32 = vld [vmem:[%s4026_s28 + $0x808] sm:$0xff] }
 0x154   : > { %2688 = vmatprep.subr.bf16.mxu1 %v2687_v28  ;;  %v709_v28 = vld [vmem:[%s4026_s28 + $0x658] sm:$0xff]  ;;  %v618_v30 = vld [vmem:[%s4026_s28 + $0x380] sm:$0xff]  ;;  %v760_v31 = vld [vmem:[%s4026_s28 + $0x7f0] sm:$0xff] }
 0x155   : > { %v4221_v33 = vld [vmem:[%s4012_s1 + $0x28] sm:$0xff]  ;;  %v614_v37 = vld [vmem:[%s4026_s28 + $0x360] sm:$0xff]  ;;  %v2711_v39 = vpack.c.bf16 %v763_v32, %v760_v31  ;;  %v624_v42 = vld [vmem:[%s4026_s28 + $0x3b0] sm:$0xff] }
 0x156   : > { %2498 = vmatpush1.bf16.msra.mxu0 %v2497_v34  ;;  %v2517_v34 = vpack.c.bf16 %v611_v25, %v608_v24  ;;  %v621_v41 = vld [vmem:[%s4026_s28 + $0x398] sm:$0xff]  ;;  %v766_v43 = vld [vmem:[%s4026_s28 + $0x820] sm:$0xff]  ;;  %v2521_v45 = vpack.c.bf16 %v617_v38, %v614_v37  ;;  %v623_v50 = vld [vmem:[%s4026_s28 + $0x3a8] sm:$0xff] }
 0x157   : > { %2690 = vmatpush3.bf16.msra.mxu1 %v2689_v35  ;;  %2500 = vmatprep.subr.bf16.mxu0 %v2499_v36  ;;  %v2709_v35 = vpack.c.bf16 %v709_v28, %v706_v26  ;;  %v2519_v36 = vpack.c.bf16 %v618_v30, %v615_v29  ;;  %v769_v44 = vld [vmem:[%s4026_s28 + $0x838] sm:$0xff]  ;;  %v718_v51 = vld [vmem:[%s4026_s28 + $0x6a0] sm:$0xff]  ;;  %v627_v54 = vld [vmem:[%s4026_s28 + $0x3c8] sm:$0xff] }
 0x158   : > { %2692 = vmatprep.subr.bf16.mxu1 %v2691_v40  ;;  %v715_v40 = vld [vmem:[%s4026_s28 + $0x688] sm:$0xff]  ;;  %v2715_v52 = vpack.c.bf16 %v769_v44, %v766_v43  ;;  %v772_v55 = vld [vmem:[%s4026_s28 + $0x850] sm:$0xff]  ;;  %v778_v3 = vld [vmem:[%s4026_s28 + $0x880] sm:$0xff] }
 0x159   : > { %v775_v56 = vld [vmem:[%s4026_s28 + $0x868] sm:$0xff]  ;;  %v724_v62 = vld [vmem:[%s4026_s28 + $0x6d0] sm:$0xff]  ;;  %v781_v4 = vld [vmem:[%s4026_s28 + $0x898] sm:$0xff] }
 0x15a   : > { %2502 = vmatpush1.bf16.msra.mxu0 %v2501_v46  ;;  %v2719_v63 = vpack.c.bf16 %v775_v56, %v772_v55  ;;  %v727_v0 = vld [vmem:[%s4026_s28 + $0x6e8] sm:$0xff]  ;;  %v636_v2 = vld [vmem:[%s4026_s28 + $0x410] sm:$0xff]  ;;  %v730_v10 = vld [vmem:[%s4026_s28 + $0x700] sm:$0xff]  ;;  %v2723_v11 = vpack.c.bf16 %v781_v4, %v778_v3 }
 0x15b   : > { %2694 = vmatpush3.bf16.msra.mxu1 %v2693_v47  ;;  %2504 = vmatprep.subr.bf16.mxu0 %v2503_v48  ;;  %v2523_v47 = vpack.c.bf16 %v624_v42, %v621_v41  ;;  %v620_v48 = vld [vmem:[%s4026_s28 + $0x390] sm:$0xff]  ;;  %v2721_v6 = vpack.c.bf16 %v727_v0, %v724_v62  ;;  %v733_v12 = vld [vmem:[%s4026_s28 + $0x718] sm:$0xff]  ;;  %v642_v14 = vld [vmem:[%s4026_s28 + $0x440] sm:$0xff] }
 0x15c   : > { %2696 = vmatprep.subr.bf16.mxu1 %v2695_v53  ;;  %v721_v53 = vld [vmem:[%s4026_s28 + $0x6b8] sm:$0xff]  ;;  %v2525_v57 = vpack.c.bf16 %v623_v50, %v620_v48  ;;  %v784_v15 = vld [vmem:[%s4026_s28 + $0x8b0] sm:$0xff]  ;;  %v787_v16 = vld [vmem:[%s4026_s28 + $0x8c8] sm:$0xff]  ;;  %v2725_v18 = vpack.c.bf16 %v733_v12, %v730_v10 }
 0x15d   : > { %v2717_v58 = vpack.c.bf16 %v721_v53, %v718_v51  ;;  %v736_v24 = vld [vmem:[%s4026_s28 + $0x730] sm:$0xff]  ;;  %v2727_v25 = vpack.c.bf16 %v787_v16, %v784_v15  ;;  %v739_v26 = vld [vmem:[%s4026_s28 + $0x748] sm:$0xff]  ;;  %v790_v29 = vld [vmem:[%s4026_s28 + $0x8e0] sm:$0xff] }
 0x15e   : > { %2506 = vmatpush1.bf16.msra.mxu0 %v2505_v59  ;;  %v648_v28 = vld [vmem:[%s4026_s28 + $0x470] sm:$0xff]  ;;  %v793_v30 = vld [vmem:[%s4026_s28 + $0x8f8] sm:$0xff]  ;;  %v2729_v32 = vpack.c.bf16 %v739_v26, %v736_v24  ;;  %v742_v37 = vld [vmem:[%s4026_s28 + $0x760] sm:$0xff] }
 0x15f   : > { %2698 = vmatpush3.bf16.msra.mxu1 %v2697_v60  ;;  %2508 = vmatprep.subr.bf16.mxu0 %v2507_v61  ;;  %v626_v60 = vld [vmem:[%s4026_s28 + $0x3c0] sm:$0xff]  ;;  %v629_v61 = vld [vmem:[%s4026_s28 + $0x3d8] sm:$0xff]  ;;  %v2731_v38 = vpack.c.bf16 %v793_v30, %v790_v29  ;;  %v1233_v41 = vld [vmem:[%s4032_s11 + $0x8] sm:$0xff] }
 0x160   : > { %2700 = vmatprep.subr.bf16.mxu1 %v2699_v1  ;;  %v633_v1 = vld [vmem:[%s4026_s28 + $0x3f8] sm:$0xff]  ;;  %v2529_v5 = vpack.c.bf16 %v629_v61, %v626_v60  ;;  %v1236_v42 = vld [vmem:[%s4032_s11 + $0x20] sm:$0xff]  ;;  %v660_v53 = vld [vmem:[%s4026_s28 + $0x4d0] sm:$0xff] }
 0x161   : > { %v1232_v48 = vld [vmem:[%s4032_s11] sm:$0xff]  ;;  %v2735_v50 = vpack.c.bf16 %v1236_v42, %v1233_v41  ;;  %v1235_v51 = vld [vmem:[%s4032_s11 + $0x18] sm:$0xff]  ;;  %v659_v60 = vld [vmem:[%s4026_s28 + $0x4c8] sm:$0xff] }
 0x162   : > { %2510 = vmatpush1.bf16.msra.mxu0 %v2509_v7  ;;  %v2531_v7 = vpack.c.bf16 %v636_v2, %v633_v1  ;;  %v4283_v55 = vld [vmem:[%s4012_s1 + $0x20] sm:$0xff]  ;;  %v663_v0 = vld [vmem:[%s4026_s28 + $0x4e8] sm:$0xff]  ;;  %v669_v12 = vld [vmem:[%s4026_s28 + $0x518] sm:$0xff] }
 0x163   : > { %2702 = vmatpush3.bf16.msra.mxu1 %v2701_v8  ;;  %2512 = vmatprep.subr.bf16.mxu0 %v2511_v9  ;;  %v632_v8 = vld [vmem:[%s4026_s28 + $0x3f0] sm:$0xff]  ;;  %v635_v9 = vld [vmem:[%s4026_s28 + $0x408] sm:$0xff]  ;;  %v666_v1 = vld [vmem:[%s4026_s28 + $0x500] sm:$0xff] }
 0x164   : > { %2704 = vmatprep.subr.bf16.mxu1 %v2703_v13  ;;  %v639_v13 = vld [vmem:[%s4026_s28 + $0x428] sm:$0xff]  ;;  %v2533_v17 = vpack.c.bf16 %v635_v9, %v632_v8  ;;  %v1238_v61 = vld [vmem:[%s4032_s11 + $0x30] sm:$0xff]  ;;  %v1248_v3 = vld [vmem:[%s4032_s11 + $0x80] sm:$0xff] }
 0x165   : > { %859 = vmatmul.mubr.f32.vlgmr.msra.gmra.mrb[0].mxu0 %v4137_v49  ;;  %v712_v49 = vld [vmem:[%s4026_s28 + $0x670] sm:$0xff]  ;;  %v1245_v2 = vld [vmem:[%s4032_s11 + $0x68] sm:$0xff]  ;;  %v665_v8 = vld [vmem:[%s4026_s28 + $0x4f8] sm:$0xff] }
 0x166   : > { %1142 = vmatmul.mubr.f32.vlgmr.msra.gmra.mrb[2].mxu1 %v4209_v19  ;;  %2514 = vmatpush1.bf16.msra.mxu0 %v2513_v20  ;;  %v2713_v46 = vpack.c.bf16 %v715_v40, %v712_v49  ;;  %v2535_v20 = vpack.c.bf16 %v642_v14, %v639_v13  ;;  %v745_v49 = vld [vmem:[%s4026_s28 + $0x778] sm:$0xff]  ;;  %v654_v40 = vld [vmem:[%s4026_s28 + $0x4a0] sm:$0xff]  ;;  %v2743_v10 = vpack.c.bf16 %v1248_v3, %v1245_v2  ;;  %v672_v13 = vld [vmem:[%s4026_s28 + $0x530] sm:$0xff] }
 0x167   : > { %2706 = vmatpush3.bf16.msra.mxu1 %v2705_v22  ;;  %2516 = vmatprep.subr.bf16.mxu0 %v2515_v23  ;;  %v638_v22 = vld [vmem:[%s4026_s28 + $0x420] sm:$0xff]  ;;  %v641_v23 = vld [vmem:[%s4026_s28 + $0x438] sm:$0xff]  ;;  %v2733_v44 = vpack.c.bf16 %v745_v49, %v742_v37  ;;  %v1254_v15 = vld [vmem:[%s4032_s11 + $0xb0] sm:$0xff] }
 0x168   : > { %2708 = vmatprep.subr.bf16.mxu1 %v2707_v27  ;;  %1211 = vmatprep.mubr.f32.mxu1 %v4221_v33  ;;  %v645_v27 = vld [vmem:[%s4026_s28 + $0x458] sm:$0xff]  ;;  %v2537_v31 = vpack.c.bf16 %v641_v23, %v638_v22  ;;  %v1244_v9 = vld [vmem:[%s4032_s11 + $0x60] sm:$0xff]  ;;  %v671_v22 = vld [vmem:[%s4026_s28 + $0x528] sm:$0xff] }
 0x169   : > { %929 = vmatprep.mubr.f32.mxu0 %v4165_v21  ;;  %v630_v21 = vld [vmem:[%s4026_s28 + $0x3e0] sm:$0xff]  ;;  %v1251_v14 = vld [vmem:[%s4032_s11 + $0x98] sm:$0xff]  ;;  %v1250_v23 = vld [vmem:[%s4032_s11 + $0x90] sm:$0xff] }
 0x16a   : > { %2518 = vmatpush1.bf16.msra.mxu0 %v2517_v34  ;;  %v2527_v59 = vpack.c.bf16 %v630_v21, %v627_v54  ;;  %v2539_v34 = vpack.c.bf16 %v648_v28, %v645_v27  ;;  %v1239_v54 = vld [vmem:[%s4032_s11 + $0x38] sm:$0xff]  ;;  %v1242_v21 = vld [vmem:[%s4032_s11 + $0x50] sm:$0xff]  ;;  %v2747_v24 = vpack.c.bf16 %v1254_v15, %v1251_v14  ;;  %v675_v26 = vld [vmem:[%s4026_s28 + $0x548] sm:$0xff] }
 0x16b   : > { %2710 = vmatpush3.bf16.msra.mxu1 %v2709_v35  ;;  %2520 = vmatprep.subr.bf16.mxu0 %v2519_v36  ;;  %v644_v35 = vld [vmem:[%s4026_s28 + $0x450] sm:$0xff]  ;;  %v647_v36 = vld [vmem:[%s4026_s28 + $0x468] sm:$0xff]  ;;  %v2739_v62 = vpack.c.bf16 %v1242_v21, %v1239_v54  ;;  %v678_v27 = vld [vmem:[%s4026_s28 + $0x560] sm:$0xff] }
 0x16c   : > { %2712 = vmatprep.subr.bf16.mxu1 %v2711_v39  ;;  %v651_v39 = vld [vmem:[%s4026_s28 + $0x488] sm:$0xff]  ;;  %v2541_v43 = vpack.c.bf16 %v647_v36, %v644_v35  ;;  %v1260_v29 = vld [vmem:[%s4032_s11 + $0xe0] sm:$0xff]  ;;  %v677_v35 = vld [vmem:[%s4026_s28 + $0x558] sm:$0xff] }
 0x16d   : > { %v1257_v28 = vld [vmem:[%s4032_s11 + $0xc8] sm:$0xff]  ;;  %v1256_v36 = vld [vmem:[%s4032_s11 + $0xc0] sm:$0xff]  ;;  %v1259_v49 = vld [vmem:[%s4032_s11 + $0xd8] sm:$0xff] }
 0x16e   : > { %2522 = vmatpush1.bf16.msra.mxu0 %v2521_v45  ;;  %v2543_v45 = vpack.c.bf16 %v654_v40, %v651_v39  ;;  %v4314_v37 = vld [vmem:[%s4019_s12 + $0x8] sm:$0xff]  ;;  %v684_v40 = vld [vmem:[%s4026_s28 + $0x590] sm:$0xff]  ;;  %v1272_v21 = vld [vmem:[%s4032_s11 + $0x140] sm:$0xff] }
 0x16f   : > { %2714 = vmatpush3.bf16.msra.mxu1 %v2713_v46  ;;  %2524 = vmatprep.subr.bf16.mxu0 %v2523_v47  ;;  %v650_v46 = vld [vmem:[%s4026_s28 + $0x480] sm:$0xff]  ;;  %v653_v47 = vld [vmem:[%s4026_s28 + $0x498] sm:$0xff]  ;;  %v1266_v42 = vld [vmem:[%s4032_s11 + $0x110] sm:$0xff] }
 0x170   : > { %2716 = vmatprep.subr.bf16.mxu1 %v2715_v52  ;;  %v657_v52 = vld [vmem:[%s4026_s28 + $0x4b8] sm:$0xff]  ;;  %v2545_v56 = vpack.c.bf16 %v653_v47, %v650_v46  ;;  %v680_v46 = vld [vmem:[%s4026_s28 + $0x570] sm:$0xff]  ;;  %v683_v47 = vld [vmem:[%s4026_s28 + $0x588] sm:$0xff] }
 0x171   : > { %v681_v39 = vld [vmem:[%s4026_s28 + $0x578] sm:$0xff]  ;;  %v1269_v54 = vld [vmem:[%s4032_s11 + $0x128] sm:$0xff]  ;;  %v1278_v3 = vld [vmem:[%s4032_s11 + $0x170] sm:$0xff] }
 0x172   : > { %2526 = vmatpush1.bf16.msra.mxu0 %v2525_v57  ;;  %v2737_v57 = vpack.c.bf16 %v1235_v51, %v1232_v48  ;;  %v1263_v41 = vld [vmem:[%s4032_s11 + $0xf8] sm:$0xff]  ;;  %v1262_v48 = vld [vmem:[%s4032_s11 + $0xf0] sm:$0xff]  ;;  %v1265_v51 = vld [vmem:[%s4032_s11 + $0x108] sm:$0xff] }
 0x173   : > { %2718 = vmatpush3.bf16.msra.mxu1 %v2717_v58  ;;  %2528 = vmatprep.subr.bf16.mxu0 %v2527_v59  ;;  %v2547_v58 = vpack.c.bf16 %v660_v53, %v657_v52  ;;  %v656_v59 = vld [vmem:[%s4026_s28 + $0x4b0] sm:$0xff]  ;;  %v687_v52 = vld [vmem:[%s4026_s28 + $0x5a8] sm:$0xff]  ;;  %v690_v53 = vld [vmem:[%s4026_s28 + $0x5c0] sm:$0xff] }
 0x174   : > { %2720 = vmatprep.subr.bf16.mxu1 %v2719_v63  ;;  %v1241_v63 = vld [vmem:[%s4032_s11 + $0x48] sm:$0xff]  ;;  %v2549_v4 = vpack.c.bf16 %v659_v60, %v656_v59  ;;  %v686_v59 = vld [vmem:[%s4026_s28 + $0x5a0] sm:$0xff]  ;;  %v689_v60 = vld [vmem:[%s4026_s28 + $0x5b8] sm:$0xff] }
 0x175   : > { %v1275_v2 = vld [vmem:[%s4032_s11 + $0x158] sm:$0xff]  ;;  %v1281_v14 = vld [vmem:[%s4032_s11 + $0x188] sm:$0xff]  ;;  %v1284_v15 = vld [vmem:[%s4032_s11 + $0x1a0] sm:$0xff] }
 0x176   : > { %2530 = vmatpush1.bf16.msra.mxu0 %v2529_v5  ;;  %v2741_v5 = vpack.c.bf16 %v1241_v63, %v1238_v61  ;;  %v1268_v61 = vld [vmem:[%s4032_s11 + $0x120] sm:$0xff]  ;;  %v1271_v63 = vld [vmem:[%s4032_s11 + $0x138] sm:$0xff] }
 0x177   : > { %2722 = vmatpush3.bf16.msra.mxu1 %v2721_v6  ;;  %2532 = vmatprep.subr.bf16.mxu0 %v2531_v7  ;;  %v2551_v6 = vpack.c.bf16 %v666_v1, %v663_v0  ;;  %v662_v7 = vld [vmem:[%s4026_s28 + $0x4e0] sm:$0xff]  ;;  %v693_v0 = vld [vmem:[%s4026_s28 + $0x5d8] sm:$0xff]  ;;  %v696_v1 = vld [vmem:[%s4026_s28 + $0x5f0] sm:$0xff] }
 0x178   : > { %2724 = vmatprep.subr.bf16.mxu1 %v2723_v11  ;;  %v1247_v11 = vld [vmem:[%s4032_s11 + $0x78] sm:$0xff]  ;;  %v2553_v16 = vpack.c.bf16 %v665_v8, %v662_v7  ;;  %v692_v7 = vld [vmem:[%s4026_s28 + $0x5d0] sm:$0xff]  ;;  %v695_v8 = vld [vmem:[%s4026_s28 + $0x5e8] sm:$0xff] }
 0x17a   : > { %2534 = vmatpush1.bf16.msra.mxu0 %v2533_v17  ;;  %v2745_v17 = vpack.c.bf16 %v1247_v11, %v1244_v9  ;;  %v1274_v9 = vld [vmem:[%s4032_s11 + $0x150] sm:$0xff]  ;;  %v1277_v11 = vld [vmem:[%s4032_s11 + $0x168] sm:$0xff] }
 0x17b   : > { %2726 = vmatpush3.bf16.msra.mxu1 %v2725_v18  ;;  %2536 = vmatprep.subr.bf16.mxu0 %v2535_v20  ;;  %v2555_v18 = vpack.c.bf16 %v672_v13, %v669_v12  ;;  %v668_v20 = vld [vmem:[%s4026_s28 + $0x510] sm:$0xff]  ;;  %v699_v12 = vld [vmem:[%s4026_s28 + $0x608] sm:$0xff]  ;;  %v702_v13 = vld [vmem:[%s4026_s28 + $0x620] sm:$0xff] }
 0x17c   : > { %2728 = vmatprep.subr.bf16.mxu1 %v2727_v25  ;;  %v1253_v25 = vld [vmem:[%s4032_s11 + $0xa8] sm:$0xff]  ;;  %v2557_v30 = vpack.c.bf16 %v671_v22, %v668_v20  ;;  %v698_v20 = vld [vmem:[%s4026_s28 + $0x600] sm:$0xff]  ;;  %v701_v22 = vld [vmem:[%s4026_s28 + $0x618] sm:$0xff] }
 0x17e   : > { %2538 = vmatpush1.bf16.msra.mxu0 %v2537_v31  ;;  %v674_v31 = vld [vmem:[%s4026_s28 + $0x540] sm:$0xff] }
 0x17f   : > { %2730 = vmatpush3.bf16.msra.mxu1 %v2729_v32  ;;  %2540 = vmatprep.subr.bf16.mxu0 %v2539_v34  ;;  %v2749_v32 = vpack.c.bf16 %v1253_v25, %v1250_v23  ;;  %v2559_v34 = vpack.c.bf16 %v678_v27, %v675_v26  ;;  %v1280_v23 = vld [vmem:[%s4032_s11 + $0x180] sm:$0xff]  ;;  %v1283_v25 = vld [vmem:[%s4032_s11 + $0x198] sm:$0xff]  ;;  %v708_v27 = vld [vmem:[%s4026_s28 + $0x650] sm:$0xff] }
 0x180   : > { %2732 = vmatprep.subr.bf16.mxu1 %v2731_v38  ;;  %v2751_v38 = vpack.c.bf16 %v1260_v29, %v1257_v28  ;;  %v705_v26 = vld [vmem:[%s4026_s28 + $0x638] sm:$0xff]  ;;  %v1290_v29 = vld [vmem:[%s4032_s11 + $0x1d0] sm:$0xff] }
 0x181   : > { %v1287_v28 = vld [vmem:[%s4032_s11 + $0x1b8] sm:$0xff] }
 0x182   : > { %2542 = vmatpush1.bf16.msra.mxu0 %v2541_v43  ;;  %v2561_v43 = vpack.c.bf16 %v677_v35, %v674_v31  ;;  %v2769_v31 = vpack.c.bf16 %v1283_v25, %v1280_v23  ;;  %v707_v35 = vld [vmem:[%s4026_s28 + $0x648] sm:$0xff]  ;;  %v738_v25 = vld [vmem:[%s4026_s28 + $0x740] sm:$0xff] }
 0x183   : > { %2734 = vmatpush3.bf16.msra.mxu1 %v2733_v44  ;;  %2544 = vmatprep.subr.bf16.mxu0 %v2543_v45  ;;  %v2753_v44 = vpack.c.bf16 %v1259_v49, %v1256_v36  ;;  %v2563_v45 = vpack.c.bf16 %v684_v40, %v681_v39  ;;  %v1286_v36 = vld [vmem:[%s4032_s11 + $0x1b0] sm:$0xff]  ;;  %v1289_v49 = vld [vmem:[%s4032_s11 + $0x1c8] sm:$0xff]  ;;  %v714_v40 = vld [vmem:[%s4026_s28 + $0x680] sm:$0xff] }
 0x184   : > { %2736 = vmatprep.subr.bf16.mxu1 %v2735_v50  ;;  %v2755_v50 = vpack.c.bf16 %v1266_v42, %v1263_v41  ;;  %v711_v39 = vld [vmem:[%s4026_s28 + $0x668] sm:$0xff]  ;;  %v1296_v42 = vld [vmem:[%s4032_s11 + $0x200] sm:$0xff] }
 0x185   : > { %v1293_v41 = vld [vmem:[%s4032_s11 + $0x1e8] sm:$0xff] }
 0x186   : > { %1212 = vmatmul.mubr.f32.vlgmr.msra.gmra.mrb[4].mxu1 %v4283_v55  ;;  %2546 = vmatpush1.bf16.msra.mxu0 %v2545_v56  ;;  %v2565_v56 = vpack.c.bf16 %v683_v47, %v680_v46  ;;  %v710_v46 = vld [vmem:[%s4026_s28 + $0x660] sm:$0xff]  ;;  %v713_v47 = vld [vmem:[%s4026_s28 + $0x678] sm:$0xff]  ;;  %v1313_v23 = vld [vmem:[%s4032_s11 + $0x288] sm:$0xff] }
 0x187   : > { %2738 = vmatpush1.bf16.msra.mxu1 %v2737_v57  ;;  %2548 = vmatprep.subr.bf16.mxu0 %v2547_v58  ;;  %v2757_v57 = vpack.c.bf16 %v1265_v51, %v1262_v48  ;;  %v2567_v58 = vpack.c.bf16 %v690_v53, %v687_v52  ;;  %v1292_v48 = vld [vmem:[%s4032_s11 + $0x1e0] sm:$0xff]  ;;  %v717_v51 = vld [vmem:[%s4026_s28 + $0x698] sm:$0xff]  ;;  %v720_v52 = vld [vmem:[%s4026_s28 + $0x6b0] sm:$0xff] }
 0x188   : > { %2740 = vmatprep.subr.bf16.mxu1 %v2739_v62  ;;  %1584 = vmatprep.mubr.f32.mxu1 %v4314_v37  ;;  %v2759_v62 = vpack.c.bf16 %v1272_v21, %v1269_v54  ;;  %v1299_v53 = vld [vmem:[%s4032_s11 + $0x218] sm:$0xff]  ;;  %v2585_v54 = vpack.c.bf16 %v713_v47, %v710_v46  ;;  %v1322_v46 = vld [vmem:[%s4032_s11 + $0x2d0] sm:$0xff] }
 0x18a   : > { %2550 = vmatpush1.bf16.msra.mxu0 %v2549_v4  ;;  %v2569_v4 = vpack.c.bf16 %v689_v60, %v686_v59  ;;  %v1298_v59 = vld [vmem:[%s4032_s11 + $0x210] sm:$0xff] }
 0x18b   : > { %2742 = vmatpush1.bf16.msra.mxu1 %v2741_v5  ;;  %2552 = vmatprep.subr.bf16.mxu0 %v2551_v6  ;;  %v2761_v5 = vpack.c.bf16 %v1271_v63, %v1268_v61  ;;  %v2571_v6 = vpack.c.bf16 %v696_v1, %v693_v0  ;;  %v1301_v61 = vld [vmem:[%s4032_s11 + $0x228] sm:$0xff]  ;;  %v726_v63 = vld [vmem:[%s4026_s28 + $0x6e0] sm:$0xff] }
 0x18c   : > { %2744 = vmatprep.subr.bf16.mxu1 %v2743_v10  ;;  %v2763_v10 = vpack.c.bf16 %v1278_v3, %v1275_v2  ;;  %v1305_v0 = vld [vmem:[%s4032_s11 + $0x248] sm:$0xff]  ;;  %v1308_v1 = vld [vmem:[%s4032_s11 + $0x260] sm:$0xff]  ;;  %v2781_v3 = vpack.c.bf16 %v1301_v61, %v1298_v59  ;;  %v1331_v59 = vld [vmem:[%s4032_s11 + $0x318] sm:$0xff] }
 0x18d   : > { %v756_v61 = vld [vmem:[%s4026_s28 + $0x7d0] sm:$0xff] }
 0x18e   : > { %2554 = vmatpush1.bf16.msra.mxu0 %v2553_v16  ;;  %v2573_v16 = vpack.c.bf16 %v695_v8, %v692_v7  ;;  %v1304_v7 = vld [vmem:[%s4032_s11 + $0x240] sm:$0xff]  ;;  %v2783_v8 = vpack.c.bf16 %v1308_v1, %v1305_v0 }
 0x18f   : > { %2746 = vmatpush1.bf16.msra.mxu1 %v2745_v17  ;;  %2556 = vmatprep.subr.bf16.mxu0 %v2555_v18  ;;  %v2765_v17 = vpack.c.bf16 %v1277_v11, %v1274_v9  ;;  %v2575_v18 = vpack.c.bf16 %v702_v13, %v699_v12  ;;  %v1307_v9 = vld [vmem:[%s4032_s11 + $0x258] sm:$0xff]  ;;  %v732_v11 = vld [vmem:[%s4026_s28 + $0x710] sm:$0xff] }
 0x190   : > { %2748 = vmatprep.subr.bf16.mxu1 %v2747_v24  ;;  %v2767_v24 = vpack.c.bf16 %v1284_v15, %v1281_v14  ;;  %v1311_v12 = vld [vmem:[%s4032_s11 + $0x278] sm:$0xff]  ;;  %v1314_v13 = vld [vmem:[%s4032_s11 + $0x290] sm:$0xff]  ;;  %v2785_v15 = vpack.c.bf16 %v1307_v9, %v1304_v7  ;;  %v759_v9 = vld [vmem:[%s4026_s28 + $0x7e8] sm:$0xff] }
 0x191   : > { %v4421_v1 = vld [vmem:[%s4019_s12] sm:$0xff] }
 0x192   : > { %2558 = vmatpush1.bf16.msra.mxu0 %v2557_v30  ;;  %v2577_v30 = vpack.c.bf16 %v701_v22, %v698_v20  ;;  %v1310_v20 = vld [vmem:[%s4032_s11 + $0x270] sm:$0xff]  ;;  %v2787_v22 = vpack.c.bf16 %v1314_v13, %v1311_v12  ;;  %v1344_v12 = vld [vmem:[%s4032_s11 + $0x380] sm:$0xff]  ;;  %v4432_v13 = vld [vmem:[%s4019_s12 + $0x18] sm:$0xff] }
 0x193   : > { %2750 = vmatpush1.bf16.msra.mxu1 %v2749_v32  ;;  %2560 = vmatprep.subr.bf16.mxu0 %v2559_v34  ;;  %v2579_v32 = vpack.c.bf16 %v708_v27, %v705_v26  ;;  %v704_v34 = vld [vmem:[%s4026_s28 + $0x630] sm:$0xff]  ;;  %v1317_v26 = vld [vmem:[%s4032_s11 + $0x2a8] sm:$0xff]  ;;  %v1320_v27 = vld [vmem:[%s4032_s11 + $0x2c0] sm:$0xff] }
 0x194   : > { %2752 = vmatprep.subr.bf16.mxu1 %v2751_v38  ;;  %v2771_v38 = vpack.c.bf16 %v1290_v29, %v1287_v28  ;;  %v2789_v29 = vpack.c.bf16 %v1313_v23, %v1310_v20  ;;  %v1340_v20 = vld [vmem:[%s4032_s11 + $0x360] sm:$0xff]  ;;  %v1343_v23 = vld [vmem:[%s4032_s11 + $0x378] sm:$0xff] }
 0x196   : > { %2562 = vmatpush1.bf16.msra.mxu0 %v2561_v43  ;;  %v2581_v43 = vpack.c.bf16 %v707_v35, %v704_v34  ;;  %v1316_v34 = vld [vmem:[%s4032_s11 + $0x2a0] sm:$0xff]  ;;  %v2791_v35 = vpack.c.bf16 %v1320_v27, %v1317_v26  ;;  %v1347_v26 = vld [vmem:[%s4032_s11 + $0x398] sm:$0xff]  ;;  %v1350_v27 = vld [vmem:[%s4032_s11 + $0x3b0] sm:$0xff] }
 0x197   : > { %2754 = vmatpush1.bf16.msra.mxu1 %v2753_v44  ;;  %2564 = vmatprep.subr.bf16.mxu0 %v2563_v45  ;;  %v2773_v44 = vpack.c.bf16 %v1289_v49, %v1286_v36  ;;  %v2583_v45 = vpack.c.bf16 %v714_v40, %v711_v39  ;;  %v1319_v36 = vld [vmem:[%s4032_s11 + $0x2b8] sm:$0xff]  ;;  %v744_v49 = vld [vmem:[%s4026_s28 + $0x770] sm:$0xff] }
 0x198   : > { %2756 = vmatprep.subr.bf16.mxu1 %v2755_v50  ;;  %v1295_v50 = vld [vmem:[%s4032_s11 + $0x1f8] sm:$0xff]  ;;  %v1326_v40 = vld [vmem:[%s4032_s11 + $0x2f0] sm:$0xff] }
 0x199   : > { %v2777_v21 = vpack.c.bf16 %v1295_v50, %v1292_v48  ;;  %v1323_v39 = vld [vmem:[%s4032_s11 + $0x2d8] sm:$0xff]  ;;  %v1325_v48 = vld [vmem:[%s4032_s11 + $0x2e8] sm:$0xff]  ;;  %v750_v50 = vld [vmem:[%s4026_s28 + $0x7a0] sm:$0xff] }
 0x19a   : > { %2566 = vmatpush1.bf16.msra.mxu0 %v2565_v56  ;;  %v2587_v56 = vpack.c.bf16 %v720_v52, %v717_v51  ;;  %v2795_v47 = vpack.c.bf16 %v1326_v40, %v1323_v39  ;;  %v1329_v51 = vld [vmem:[%s4032_s11 + $0x308] sm:$0xff]  ;;  %v1332_v52 = vld [vmem:[%s4032_s11 + $0x320] sm:$0xff] }
 0x19b   : > { %2758 = vmatpush1.bf16.msra.mxu1 %v2757_v57  ;;  %2568 = vmatprep.subr.bf16.mxu0 %v2567_v58  ;;  %v716_v57 = vld [vmem:[%s4026_s28 + $0x690] sm:$0xff]  ;;  %v719_v58 = vld [vmem:[%s4026_s28 + $0x6a8] sm:$0xff]  ;;  %v1356_v40 = vld [vmem:[%s4032_s11 + $0x3e0] sm:$0xff] }
 0x19c   : > { %2760 = vmatprep.subr.bf16.mxu1 %v2759_v62  ;;  %v723_v62 = vld [vmem:[%s4026_s28 + $0x6c8] sm:$0xff]  ;;  %v2589_v2 = vpack.c.bf16 %v719_v58, %v716_v57  ;;  %v1328_v57 = vld [vmem:[%s4032_s11 + $0x300] sm:$0xff]  ;;  %v2799_v58 = vpack.c.bf16 %v1332_v52, %v1329_v51  ;;  %v1359_v51 = vld [vmem:[%s4032_s11 + $0x3f8] sm:$0xff] }
 0x19d   : > { %v1353_v39 = vld [vmem:[%s4032_s11 + $0x3c8] sm:$0xff]  ;;  %v1362_v52 = vld [vmem:[%s4032_s11 + $0x410] sm:$0xff] }
 0x19e   : > { %2570 = vmatpush1.bf16.msra.mxu0 %v2569_v4  ;;  %v2591_v4 = vpack.c.bf16 %v726_v63, %v723_v62  ;;  %v1335_v62 = vld [vmem:[%s4032_s11 + $0x338] sm:$0xff]  ;;  %v1338_v63 = vld [vmem:[%s4032_s11 + $0x350] sm:$0xff] }
 0x19f   : > { %2762 = vmatpush1.bf16.msra.mxu1 %v2761_v5  ;;  %2572 = vmatprep.subr.bf16.mxu0 %v2571_v6  ;;  %v722_v5 = vld [vmem:[%s4026_s28 + $0x6c0] sm:$0xff]  ;;  %v725_v6 = vld [vmem:[%s4026_s28 + $0x6d8] sm:$0xff]  ;;  %v2803_v7 = vpack.c.bf16 %v1338_v63, %v1335_v62  ;;  %v1365_v62 = vld [vmem:[%s4032_s11 + $0x428] sm:$0xff] }
 0x1a0   : > { %2764 = vmatprep.subr.bf16.mxu1 %v2763_v10  ;;  %v729_v10 = vld [vmem:[%s4026_s28 + $0x6f8] sm:$0xff]  ;;  %v2593_v14 = vpack.c.bf16 %v725_v6, %v722_v5  ;;  %v755_v5 = vld [vmem:[%s4026_s28 + $0x7c8] sm:$0xff]  ;;  %v1334_v6 = vld [vmem:[%s4032_s11 + $0x330] sm:$0xff] }
 0x1a1   : > { %v1368_v63 = vld [vmem:[%s4032_s11 + $0x440] sm:$0xff] }
 0x1a2   : > { %2574 = vmatpush1.bf16.msra.mxu0 %v2573_v16  ;;  %v2595_v16 = vpack.c.bf16 %v732_v11, %v729_v10  ;;  %v762_v10 = vld [vmem:[%s4026_s28 + $0x800] sm:$0xff]  ;;  %v1341_v11 = vld [vmem:[%s4032_s11 + $0x368] sm:$0xff] }
 0x1a3   : > { %2766 = vmatpush1.bf16.msra.mxu1 %v2765_v17  ;;  %2576 = vmatprep.subr.bf16.mxu0 %v2575_v18  ;;  %v728_v17 = vld [vmem:[%s4026_s28 + $0x6f0] sm:$0xff]  ;;  %v731_v18 = vld [vmem:[%s4026_s28 + $0x708] sm:$0xff] }
 0x1a4   : > { %2768 = vmatprep.subr.bf16.mxu1 %v2767_v24  ;;  %v735_v24 = vld [vmem:[%s4026_s28 + $0x728] sm:$0xff]  ;;  %v2597_v28 = vpack.c.bf16 %v731_v18, %v728_v17  ;;  %v758_v17 = vld [vmem:[%s4026_s28 + $0x7e0] sm:$0xff]  ;;  %v761_v18 = vld [vmem:[%s4026_s28 + $0x7f8] sm:$0xff] }
 0x1a5   : > { %930 = vmatmul.mubr.f32.vlgmr.msra.gmra.mrb[0].mxu0 %v4209_v19  ;;  %v2775_v19 = vpack.c.bf16 %v1296_v42, %v1293_v41  ;;  %v2793_v42 = vpack.c.bf16 %v1319_v36, %v1316_v34  ;;  %v1346_v34 = vld [vmem:[%s4032_s11 + $0x390] sm:$0xff]  ;;  %v1349_v36 = vld [vmem:[%s4032_s11 + $0x3a8] sm:$0xff] }
 0x1a6   : > { %2578 = vmatpush1.bf16.msra.mxu0 %v2577_v30  ;;  %1000 = vmatprep.mubr.f32.mxu0 %v4221_v33  ;;  %v1302_v33 = vld [vmem:[%s4032_s11 + $0x230] sm:$0xff]  ;;  %v2599_v30 = vpack.c.bf16 %v738_v25, %v735_v24  ;;  %v765_v24 = vld [vmem:[%s4026_s28 + $0x818] sm:$0xff] }
 0x1a7   : > { %2770 = vmatpush1.bf16.msra.mxu1 %v2769_v31  ;;  %2580 = vmatprep.subr.bf16.mxu0 %v2579_v32  ;;  %v2779_v60 = vpack.c.bf16 %v1302_v33, %v1299_v53  ;;  %v734_v31 = vld [vmem:[%s4026_s28 + $0x720] sm:$0xff]  ;;  %v737_v32 = vld [vmem:[%s4026_s28 + $0x738] sm:$0xff]  ;;  %v2797_v33 = vpack.c.bf16 %v1325_v48, %v1322_v46  ;;  %v768_v25 = vld [vmem:[%s4026_s28 + $0x830] sm:$0xff] }
 0x1a8   : > { %2772 = vmatprep.subr.bf16.mxu1 %v2771_v38  ;;  %v741_v38 = vld [vmem:[%s4026_s28 + $0x758] sm:$0xff]  ;;  %v2601_v41 = vpack.c.bf16 %v737_v32, %v734_v31  ;;  %v764_v31 = vld [vmem:[%s4026_s28 + $0x810] sm:$0xff]  ;;  %v767_v32 = vld [vmem:[%s4026_s28 + $0x828] sm:$0xff] }
 0x1a9   : > { %v1352_v46 = vld [vmem:[%s4032_s11 + $0x3c0] sm:$0xff]  ;;  %v1355_v48 = vld [vmem:[%s4032_s11 + $0x3d8] sm:$0xff] }
 0x1aa   : > { %2582 = vmatpush1.bf16.msra.mxu0 %v2581_v43  ;;  %v2603_v43 = vpack.c.bf16 %v744_v49, %v741_v38  ;;  %v771_v38 = vld [vmem:[%s4026_s28 + $0x848] sm:$0xff]  ;;  %v774_v49 = vld [vmem:[%s4026_s28 + $0x860] sm:$0xff] }
 0x1ab   : > { %2774 = vmatpush1.bf16.msra.mxu1 %v2773_v44  ;;  %2584 = vmatprep.subr.bf16.mxu0 %v2583_v45  ;;  %v740_v44 = vld [vmem:[%s4026_s28 + $0x750] sm:$0xff]  ;;  %v743_v45 = vld [vmem:[%s4026_s28 + $0x768] sm:$0xff] }
 0x1ac   : > { %2776 = vmatprep.subr.bf16.mxu1 %v2775_v19  ;;  %v747_v19 = vld [vmem:[%s4026_s28 + $0x788] sm:$0xff]  ;;  %v2605_v53 = vpack.c.bf16 %v743_v45, %v740_v44  ;;  %v770_v44 = vld [vmem:[%s4026_s28 + $0x840] sm:$0xff]  ;;  %v773_v45 = vld [vmem:[%s4026_s28 + $0x858] sm:$0xff] }
 0x1ae   : > { %2586 = vmatpush1.bf16.msra.mxu0 %v2585_v54  ;;  %v2607_v54 = vpack.c.bf16 %v750_v50, %v747_v19  ;;  %v777_v19 = vld [vmem:[%s4026_s28 + $0x878] sm:$0xff]  ;;  %v780_v50 = vld [vmem:[%s4026_s28 + $0x890] sm:$0xff] }
 0x1af   : > { %2778 = vmatpush1.bf16.msra.mxu1 %v2777_v21  ;;  %2588 = vmatprep.subr.bf16.mxu0 %v2587_v56  ;;  %v746_v21 = vld [vmem:[%s4026_s28 + $0x780] sm:$0xff]  ;;  %v749_v56 = vld [vmem:[%s4026_s28 + $0x798] sm:$0xff] }
 0x1b0   : > { %2780 = vmatprep.subr.bf16.mxu1 %v2779_v60  ;;  %v753_v60 = vld [vmem:[%s4026_s28 + $0x7b8] sm:$0xff]  ;;  %v2609_v0 = vpack.c.bf16 %v749_v56, %v746_v21  ;;  %v776_v21 = vld [vmem:[%s4026_s28 + $0x870] sm:$0xff]  ;;  %v779_v56 = vld [vmem:[%s4026_s28 + $0x888] sm:$0xff] }
 0x1b2   : > { %2590 = vmatpush1.bf16.msra.mxu0 %v2589_v2  ;;  %v2801_v2 = vpack.c.bf16 %v1331_v59, %v1328_v57  ;;  %v1358_v57 = vld [vmem:[%s4032_s11 + $0x3f0] sm:$0xff]  ;;  %v1361_v59 = vld [vmem:[%s4032_s11 + $0x408] sm:$0xff] }
 0x1b3   : > { %2782 = vmatpush1.bf16.msra.mxu1 %v2781_v3  ;;  %2592 = vmatprep.subr.bf16.mxu0 %v2591_v4  ;;  %v2611_v3 = vpack.c.bf16 %v756_v61, %v753_v60  ;;  %v752_v4 = vld [vmem:[%s4026_s28 + $0x7b0] sm:$0xff]  ;;  %v783_v60 = vld [vmem:[%s4026_s28 + $0x8a8] sm:$0xff]  ;;  %v786_v61 = vld [vmem:[%s4026_s28 + $0x8c0] sm:$0xff] }
 0x1b4   : > { %2784 = vmatprep.subr.bf16.mxu1 %v2783_v8  ;;  %v1337_v8 = vld [vmem:[%s4032_s11 + $0x348] sm:$0xff] }
 0x1b6   : > { %2594 = vmatpush1.bf16.msra.mxu0 %v2593_v14  ;;  %v2613_v14 = vpack.c.bf16 %v755_v5, %v752_v4  ;;  %v782_v4 = vld [vmem:[%s4026_s28 + $0x8a0] sm:$0xff]  ;;  %v785_v5 = vld [vmem:[%s4026_s28 + $0x8b8] sm:$0xff] }
 0x1b7   : > { %2786 = vmatpush1.bf16.msra.mxu1 %v2785_v15  ;;  %2596 = vmatprep.subr.bf16.mxu0 %v2595_v16  ;;  %v2805_v15 = vpack.c.bf16 %v1337_v8, %v1334_v6  ;;  %v2615_v16 = vpack.c.bf16 %v762_v10, %v759_v9  ;;  %v1364_v6 = vld [vmem:[%s4032_s11 + $0x420] sm:$0xff]  ;;  %v1367_v8 = vld [vmem:[%s4032_s11 + $0x438] sm:$0xff]  ;;  %v792_v10 = vld [vmem:[%s4026_s28 + $0x8f0] sm:$0xff] }
 0x1b8   : > { %2788 = vmatprep.subr.bf16.mxu1 %v2787_v22  ;;  %v2807_v22 = vpack.c.bf16 %v1344_v12, %v1341_v11  ;;  %v789_v9 = vld [vmem:[%s4026_s28 + $0x8d8] sm:$0xff]  ;;  %v1374_v12 = vld [vmem:[%s4032_s11 + $0x470] sm:$0xff] }
 0x1b9   : > { %v1371_v11 = vld [vmem:[%s4032_s11 + $0x458] sm:$0xff] }
 0x1ba   : > { %2598 = vmatpush1.bf16.msra.mxu0 %v2597_v28  ;;  %v2617_v28 = vpack.c.bf16 %v761_v18, %v758_v17  ;;  %v788_v17 = vld [vmem:[%s4026_s28 + $0x8d0] sm:$0xff]  ;;  %v791_v18 = vld [vmem:[%s4026_s28 + $0x8e8] sm:$0xff] }
 0x1bb   : > { %2790 = vmatpush1.bf16.msra.mxu1 %v2789_v29  ;;  %2600 = vmatprep.subr.bf16.mxu0 %v2599_v30  ;;  %v2809_v29 = vpack.c.bf16 %v1343_v23, %v1340_v20  ;;  %v2619_v30 = vpack.c.bf16 %v768_v25, %v765_v24  ;;  %v1370_v20 = vld [vmem:[%s4032_s11 + $0x450] sm:$0xff]  ;;  %v1373_v23 = vld [vmem:[%s4032_s11 + $0x468] sm:$0xff] }
 0x1bc   : > { %2792 = vmatprep.subr.bf16.mxu1 %v2791_v35  ;;  %v2811_v35 = vpack.c.bf16 %v1350_v27, %v1347_v26  ;;  %v1282_v24 = vld [vmem:[%s4032_s11 + $0x190] sm:$0xff]  ;;  %v1285_v25 = vld [vmem:[%s4032_s11 + $0x1a8] sm:$0xff]  ;;  %v1380_v27 = vld [vmem:[%s4032_s11 + $0x4a0] sm:$0xff] }
 0x1bd   : > { %v1377_v26 = vld [vmem:[%s4032_s11 + $0x488] sm:$0xff] }
 0x1be   : > { %2602 = vmatpush1.bf16.msra.mxu0 %v2601_v41  ;;  %v2621_v41 = vpack.c.bf16 %v767_v32, %v764_v31  ;;  %v1376_v31 = vld [vmem:[%s4032_s11 + $0x480] sm:$0xff]  ;;  %v1234_v32 = vld [vmem:[%s4032_s11 + $0x10] sm:$0xff] }
 0x1bf   : > { %2794 = vmatpush1.bf16.msra.mxu1 %v2793_v42  ;;  %2604 = vmatprep.subr.bf16.mxu0 %v2603_v43  ;;  %v2813_v42 = vpack.c.bf16 %v1349_v36, %v1346_v34  ;;  %v2623_v43 = vpack.c.bf16 %v774_v49, %v771_v38  ;;  %v1237_v34 = vld [vmem:[%s4032_s11 + $0x28] sm:$0xff]  ;;  %v1379_v36 = vld [vmem:[%s4032_s11 + $0x498] sm:$0xff]  ;;  %v1288_v38 = vld [vmem:[%s4032_s11 + $0x1c0] sm:$0xff] }
 0x1c0   : > { %2796 = vmatprep.subr.bf16.mxu1 %v2795_v47  ;;  %v2815_v47 = vpack.c.bf16 %v1356_v40, %v1353_v39  ;;  %v1291_v49 = vld [vmem:[%s4032_s11 + $0x1d8] sm:$0xff]  ;;  %v1386_v40 = vld [vmem:[%s4032_s11 + $0x4d0] sm:$0xff] }
 0x1c1   : > { %v1383_v39 = vld [vmem:[%s4032_s11 + $0x4b8] sm:$0xff] }
 0x1c2   : > { %2606 = vmatpush1.bf16.msra.mxu0 %v2605_v53  ;;  %v2625_v53 = vpack.c.bf16 %v773_v45, %v770_v44  ;;  %v1382_v44 = vld [vmem:[%s4032_s11 + $0x4b0] sm:$0xff]  ;;  %v1240_v45 = vld [vmem:[%s4032_s11 + $0x40] sm:$0xff] }
 0x1c3   : > { %2798 = vmatpush1.bf16.msra.mxu1 %v2797_v33  ;;  %2608 = vmatprep.subr.bf16.mxu0 %v2607_v54  ;;  %v2817_v33 = vpack.c.bf16 %v1355_v48, %v1352_v46  ;;  %v2627_v54 = vpack.c.bf16 %v780_v50, %v777_v19  ;;  %v1243_v46 = vld [vmem:[%s4032_s11 + $0x58] sm:$0xff]  ;;  %v1385_v48 = vld [vmem:[%s4032_s11 + $0x4c8] sm:$0xff]  ;;  %v1294_v19 = vld [vmem:[%s4032_s11 + $0x1f0] sm:$0xff] }
 0x1c4   : > { %2800 = vmatprep.subr.bf16.mxu1 %v2799_v58  ;;  %v2819_v58 = vpack.c.bf16 %v1362_v52, %v1359_v51  ;;  %v1297_v50 = vld [vmem:[%s4032_s11 + $0x208] sm:$0xff]  ;;  %v1392_v52 = vld [vmem:[%s4032_s11 + $0x500] sm:$0xff] }
 0x1c5   : > { %v1389_v51 = vld [vmem:[%s4032_s11 + $0x4e8] sm:$0xff] }
 0x1c6   : > { %2610 = vmatpush1.bf16.msra.mxu0 %v2609_v0  ;;  %1585 = vmatmul.mubr.f32.vlgmr.msra.gmra.mrb[6].mxu1 %v4421_v1  ;;  %v2629_v0 = vpack.c.bf16 %v779_v56, %v776_v21  ;;  %v1388_v21 = vld [vmem:[%s4032_s11 + $0x4e0] sm:$0xff]  ;;  %v1246_v56 = vld [vmem:[%s4032_s11 + $0x70] sm:$0xff] }
 0x1c7   : > { %2802 = vmatpush1.bf16.msra.mxu1 %v2801_v2  ;;  %2612 = vmatprep.subr.bf16.mxu0 %v2611_v3  ;;  %v2821_v2 = vpack.c.bf16 %v1361_v59, %v1358_v57  ;;  %v2631_v3 = vpack.c.bf16 %v786_v61, %v783_v60  ;;  %v1249_v57 = vld [vmem:[%s4032_s11 + $0x88] sm:$0xff]  ;;  %v1300_v59 = vld [vmem:[%s4032_s11 + $0x220] sm:$0xff]  ;;  %v1303_v60 = vld [vmem:[%s4032_s11 + $0x238] sm:$0xff] }
 0x1c8   : > { %2804 = vmatprep.subr.bf16.mxu1 %v2803_v7  ;;  %1655 = vmatprep.mubr.f32.mxu1 %v4432_v13  ;;  %v2823_v7 = vpack.c.bf16 %v1368_v63, %v1365_v62  ;;  %v1395_v61 = vld [vmem:[%s4032_s11 + $0x518] sm:$0xff]  ;;  %v2937_v62 = vpack.c.bf16 %v1249_v57, %v1246_v56  ;;  %v1421_v57 = vld [vmem:[%s4032_s11 + $0x5e8] sm:$0xff] }
 0x1ca   : > { %2614 = vmatpush1.bf16.msra.mxu0 %v2613_v14  ;;  %v2633_v14 = vpack.c.bf16 %v785_v5, %v782_v4  ;;  %v1255_v4 = vld [vmem:[%s4032_s11 + $0xb8] sm:$0xff] }
 0x1cb   : > { %2806 = vmatpush1.bf16.msra.mxu1 %v2805_v15  ;;  %2616 = vmatprep.subr.bf16.mxu0 %v2615_v16  ;;  %v2825_v15 = vpack.c.bf16 %v1367_v8, %v1364_v6  ;;  %v2635_v16 = vpack.c.bf16 %v792_v10, %v789_v9  ;;  %v1397_v6 = vld [vmem:[%s4032_s11 + $0x528] sm:$0xff]  ;;  %v1404_v10 = vld [vmem:[%s4032_s11 + $0x560] sm:$0xff] }
 0x1cc   : > { %2808 = vmatprep.subr.bf16.mxu1 %v2807_v22  ;;  %v2827_v22 = vpack.c.bf16 %v1374_v12, %v1371_v11  ;;  %v1309_v8 = vld [vmem:[%s4032_s11 + $0x268] sm:$0xff] }
 0x1cd   : > { %v1401_v9 = vld [vmem:[%s4032_s11 + $0x548] sm:$0xff] }
 0x1ce   : > { %2618 = vmatpush1.bf16.msra.mxu0 %v2617_v28  ;;  %v2637_v28 = vpack.c.bf16 %v791_v18, %v788_v17  ;;  %v1261_v17 = vld [vmem:[%s4032_s11 + $0xe8] sm:$0xff]  ;;  %v2847_v18 = vpack.c.bf16 %v1404_v10, %v1401_v9  ;;  %v4559_v9 = vld [vmem:[%s4019_s12 + $0x10] sm:$0xff] }
 0x1cf   : > { %2810 = vmatpush1.bf16.msra.mxu1 %v2809_v29  ;;  %2620 = vmatprep.subr.bf16.mxu0 %v2619_v30  ;;  %v2829_v29 = vpack.c.bf16 %v1373_v23, %v1370_v20  ;;  %v2927_v30 = vpack.c.bf16 %v1285_v25, %v1282_v24  ;;  %v1403_v20 = vld [vmem:[%s4032_s11 + $0x558] sm:$0xff]  ;;  %v1410_v25 = vld [vmem:[%s4032_s11 + $0x590] sm:$0xff] }
 0x1d0   : > { %2812 = vmatprep.subr.bf16.mxu1 %v2811_v35  ;;  %v2831_v35 = vpack.c.bf16 %v1380_v27, %v1377_v26  ;;  %v1315_v23 = vld [vmem:[%s4032_s11 + $0x298] sm:$0xff] }
 0x1d1   : > { %v1407_v24 = vld [vmem:[%s4032_s11 + $0x578] sm:$0xff] }
 0x1d2   : > { %2622 = vmatpush1.bf16.msra.mxu0 %v2621_v41  ;;  %v2929_v41 = vpack.c.bf16 %v1237_v34, %v1234_v32  ;;  %v2851_v32 = vpack.c.bf16 %v1410_v25, %v1407_v24  ;;  %v1409_v34 = vld [vmem:[%s4032_s11 + $0x588] sm:$0xff]  ;;  %v1440_v24 = vld [vmem:[%s4032_s11 + $0x680] sm:$0xff] }
 0x1d3   : > { %2814 = vmatpush1.bf16.msra.mxu1 %v2813_v42  ;;  %2624 = vmatprep.subr.bf16.mxu0 %v2623_v43  ;;  %v2833_v42 = vpack.c.bf16 %v1379_v36, %v1376_v31  ;;  %v2931_v43 = vpack.c.bf16 %v1291_v49, %v1288_v38  ;;  %v1267_v31 = vld [vmem:[%s4032_s11 + $0x118] sm:$0xff]  ;;  %v1321_v36 = vld [vmem:[%s4032_s11 + $0x2c8] sm:$0xff]  ;;  %v1416_v49 = vld [vmem:[%s4032_s11 + $0x5c0] sm:$0xff] }
 0x1d4   : > { %2816 = vmatprep.subr.bf16.mxu1 %v2815_v47  ;;  %v2835_v47 = vpack.c.bf16 %v1386_v40, %v1383_v39  ;;  %v1413_v38 = vld [vmem:[%s4032_s11 + $0x5a8] sm:$0xff] }
 0x1d6   : > { %2626 = vmatpush1.bf16.msra.mxu0 %v2625_v53  ;;  %v2933_v53 = vpack.c.bf16 %v1243_v46, %v1240_v45  ;;  %v2855_v45 = vpack.c.bf16 %v1416_v49, %v1413_v38  ;;  %v1415_v46 = vld [vmem:[%s4032_s11 + $0x5b8] sm:$0xff]  ;;  %v1446_v38 = vld [vmem:[%s4032_s11 + $0x6b0] sm:$0xff] }
 0x1d7   : > { %2818 = vmatpush1.bf16.msra.mxu1 %v2817_v33  ;;  %2628 = vmatprep.subr.bf16.mxu0 %v2627_v54  ;;  %v2837_v33 = vpack.c.bf16 %v1385_v48, %v1382_v44  ;;  %v2935_v54 = vpack.c.bf16 %v1297_v50, %v1294_v19  ;;  %v1273_v44 = vld [vmem:[%s4032_s11 + $0x148] sm:$0xff]  ;;  %v1327_v48 = vld [vmem:[%s4032_s11 + $0x2f8] sm:$0xff]  ;;  %v1422_v50 = vld [vmem:[%s4032_s11 + $0x5f0] sm:$0xff] }
 0x1d8   : > { %2820 = vmatprep.subr.bf16.mxu1 %v2819_v58  ;;  %v1391_v58 = vld [vmem:[%s4032_s11 + $0x4f8] sm:$0xff] }
 0x1d9   : > { %v2841_v63 = vpack.c.bf16 %v1391_v58, %v1388_v21  ;;  %v1419_v19 = vld [vmem:[%s4032_s11 + $0x5d8] sm:$0xff]  ;;  %v1381_v58 = vld [vmem:[%s4032_s11 + $0x4a8] sm:$0xff] }
 0x1da   : > { %2630 = vmatpush1.bf16.msra.mxu0 %v2629_v0  ;;  %v2939_v0 = vpack.c.bf16 %v1303_v60, %v1300_v59  ;;  %v1279_v21 = vld [vmem:[%s4032_s11 + $0x178] sm:$0xff]  ;;  %v2859_v56 = vpack.c.bf16 %v1422_v50, %v1419_v19  ;;  %v1425_v59 = vld [vmem:[%s4032_s11 + $0x608] sm:$0xff]  ;;  %v1428_v60 = vld [vmem:[%s4032_s11 + $0x620] sm:$0xff] }
 0x1db   : > { %2822 = vmatpush1.bf16.msra.mxu1 %v2821_v2  ;;  %2632 = vmatprep.subr.bf16.mxu0 %v2631_v3  ;;  %v1394_v2 = vld [vmem:[%s4032_s11 + $0x510] sm:$0xff]  ;;  %v1252_v3 = vld [vmem:[%s4032_s11 + $0xa0] sm:$0xff] }
 0x1dc   : > { %2824 = vmatprep.subr.bf16.mxu1 %v2823_v7  ;;  %v1306_v7 = vld [vmem:[%s4032_s11 + $0x250] sm:$0xff]  ;;  %v2941_v11 = vpack.c.bf16 %v1255_v4, %v1252_v3  ;;  %v2845_v12 = vpack.c.bf16 %v1397_v6, %v1394_v2  ;;  %v1333_v2 = vld [vmem:[%s4032_s11 + $0x328] sm:$0xff]  ;;  %v2863_v3 = vpack.c.bf16 %v1428_v60, %v1425_v59  ;;  %v1427_v4 = vld [vmem:[%s4032_s11 + $0x618] sm:$0xff] }
 0x1dd   : > { %v1387_v6 = vld [vmem:[%s4032_s11 + $0x4d8] sm:$0xff] }
 0x1de   : > { %2634 = vmatpush1.bf16.msra.mxu0 %v2633_v14  ;;  %v2943_v14 = vpack.c.bf16 %v1309_v8, %v1306_v7  ;;  %v1431_v7 = vld [vmem:[%s4032_s11 + $0x638] sm:$0xff]  ;;  %v1434_v8 = vld [vmem:[%s4032_s11 + $0x650] sm:$0xff] }
 0x1df   : > { %2826 = vmatpush1.bf16.msra.mxu1 %v2825_v15  ;;  %2636 = vmatprep.subr.bf16.mxu0 %v2635_v16  ;;  %v1400_v15 = vld [vmem:[%s4032_s11 + $0x540] sm:$0xff]  ;;  %v1258_v16 = vld [vmem:[%s4032_s11 + $0xd0] sm:$0xff] }
 0x1e0   : > { %2828 = vmatprep.subr.bf16.mxu1 %v2827_v22  ;;  %v1312_v22 = vld [vmem:[%s4032_s11 + $0x280] sm:$0xff]  ;;  %v2945_v26 = vpack.c.bf16 %v1261_v17, %v1258_v16  ;;  %v2849_v27 = vpack.c.bf16 %v1403_v20, %v1400_v15  ;;  %v1339_v16 = vld [vmem:[%s4032_s11 + $0x358] sm:$0xff]  ;;  %v2867_v17 = vpack.c.bf16 %v1434_v8, %v1431_v7  ;;  %v1390_v20 = vld [vmem:[%s4032_s11 + $0x4f0] sm:$0xff] }
 0x1e1   : > { %v1336_v15 = vld [vmem:[%s4032_s11 + $0x340] sm:$0xff] }
 0x1e2   : > { %2638 = vmatpush1.bf16.msra.mxu0 %v2637_v28  ;;  %v2947_v28 = vpack.c.bf16 %v1315_v23, %v1312_v22  ;;  %v1393_v22 = vld [vmem:[%s4032_s11 + $0x508] sm:$0xff]  ;;  %v2965_v25 = vpack.c.bf16 %v1339_v16, %v1336_v15  ;;  %v1463_v16 = vld [vmem:[%s4032_s11 + $0x738] sm:$0xff] }
 0x1e3   : > { %2830 = vmatpush1.bf16.msra.mxu1 %v2829_v29  ;;  %2928 = vmatprep.subr.bf16.mxu0 %v2927_v30  ;;  %v1406_v29 = vld [vmem:[%s4032_s11 + $0x570] sm:$0xff]  ;;  %v1264_v30 = vld [vmem:[%s4032_s11 + $0x100] sm:$0xff]  ;;  %v1437_v23 = vld [vmem:[%s4032_s11 + $0x668] sm:$0xff] }
 0x1e4   : > { %2832 = vmatprep.subr.bf16.mxu1 %v2831_v35  ;;  %v1318_v35 = vld [vmem:[%s4032_s11 + $0x2b0] sm:$0xff]  ;;  %v2949_v39 = vpack.c.bf16 %v1267_v31, %v1264_v30  ;;  %v2853_v40 = vpack.c.bf16 %v1409_v34, %v1406_v29  ;;  %v1436_v29 = vld [vmem:[%s4032_s11 + $0x660] sm:$0xff]  ;;  %v2871_v31 = vpack.c.bf16 %v1440_v24, %v1437_v23 }
 0x1e5   : > { %1001 = vmatmul.mubr.f32.vlgmr.msra.gmra.mrb[0].mxu0 %v4283_v55  ;;  %v2839_v55 = vpack.c.bf16 %v1392_v52, %v1389_v51  ;;  %v1342_v30 = vld [vmem:[%s4032_s11 + $0x370] sm:$0xff]  ;;  %v1396_v34 = vld [vmem:[%s4032_s11 + $0x520] sm:$0xff] }
 0x1e6   : > { %2930 = vmatpush3.bf16.msra.mxu0 %v2929_v41  ;;  %1797 = vmatprep.mubr.f32.mxu0 %v4314_v37  ;;  %v1398_v37 = vld [vmem:[%s4032_s11 + $0x530] sm:$0xff]  ;;  %v2951_v41 = vpack.c.bf16 %v1321_v36, %v1318_v35  ;;  %v1399_v35 = vld [vmem:[%s4032_s11 + $0x538] sm:$0xff] }
 0x1e7   : > { %2834 = vmatpush1.bf16.msra.mxu1 %v2833_v42  ;;  %2932 = vmatprep.subr.bf16.mxu0 %v2931_v43  ;;  %v2843_v5 = vpack.c.bf16 %v1398_v37, %v1395_v61  ;;  %v1412_v42 = vld [vmem:[%s4032_s11 + $0x5a0] sm:$0xff]  ;;  %v1270_v43 = vld [vmem:[%s4032_s11 + $0x130] sm:$0xff]  ;;  %v1443_v36 = vld [vmem:[%s4032_s11 + $0x698] sm:$0xff] }
 0x1e8   : > { %2836 = vmatprep.subr.bf16.mxu1 %v2835_v47  ;;  %v1324_v47 = vld [vmem:[%s4032_s11 + $0x2e0] sm:$0xff]  ;;  %v2953_v51 = vpack.c.bf16 %v1273_v44, %v1270_v43  ;;  %v2857_v52 = vpack.c.bf16 %v1415_v46, %v1412_v42  ;;  %v1351_v43 = vld [vmem:[%s4032_s11 + $0x3b8] sm:$0xff]  ;;  %v1445_v44 = vld [vmem:[%s4032_s11 + $0x6a8] sm:$0xff] }
 0x1e9   : > { %v1348_v42 = vld [vmem:[%s4032_s11 + $0x3a0] sm:$0xff]  ;;  %v1405_v46 = vld [vmem:[%s4032_s11 + $0x568] sm:$0xff]  ;;  %v1470_v23 = vld [vmem:[%s4032_s11 + $0x770] sm:$0xff] }
 0x1ea   : > { %2934 = vmatpush3.bf16.msra.mxu0 %v2933_v53  ;;  %v2955_v53 = vpack.c.bf16 %v1327_v48, %v1324_v47  ;;  %v1449_v47 = vld [vmem:[%s4032_s11 + $0x6c8] sm:$0xff]  ;;  %v1452_v48 = vld [vmem:[%s4032_s11 + $0x6e0] sm:$0xff]  ;;  %v2973_v19 = vpack.c.bf16 %v1351_v43, %v1348_v42  ;;  %v1426_v43 = vld [vmem:[%s4032_s11 + $0x610] sm:$0xff] }
 0x1eb   : > { %2838 = vmatpush1.bf16.msra.mxu1 %v2837_v33  ;;  %2936 = vmatprep.subr.bf16.mxu0 %v2935_v54  ;;  %v1418_v33 = vld [vmem:[%s4032_s11 + $0x5d0] sm:$0xff]  ;;  %v1276_v54 = vld [vmem:[%s4032_s11 + $0x160] sm:$0xff] }
 0x1ec   : > { %2840 = vmatprep.subr.bf16.mxu1 %v2839_v55  ;;  %v1378_v55 = vld [vmem:[%s4032_s11 + $0x490] sm:$0xff]  ;;  %v2957_v61 = vpack.c.bf16 %v1279_v21, %v1276_v54  ;;  %v2861_v37 = vpack.c.bf16 %v1421_v57, %v1418_v33  ;;  %v1357_v33 = vld [vmem:[%s4032_s11 + $0x3e8] sm:$0xff]  ;;  %v2879_v54 = vpack.c.bf16 %v1452_v48, %v1449_v47  ;;  %v1451_v21 = vld [vmem:[%s4032_s11 + $0x6d8] sm:$0xff] }
 0x1ed   : > { %v1411_v57 = vld [vmem:[%s4032_s11 + $0x598] sm:$0xff]  ;;  %v1472_v42 = vld [vmem:[%s4032_s11 + $0x780] sm:$0xff] }
 0x1ee   : > { %2938 = vmatpush3.bf16.msra.mxu0 %v2937_v62  ;;  %v2959_v62 = vpack.c.bf16 %v1381_v58, %v1378_v55  ;;  %v1455_v55 = vld [vmem:[%s4032_s11 + $0x6f8] sm:$0xff]  ;;  %v1458_v58 = vld [vmem:[%s4032_s11 + $0x710] sm:$0xff] }
 0x1ef   : > { %2842 = vmatpush1.bf16.msra.mxu1 %v2841_v63  ;;  %2940 = vmatprep.subr.bf16.mxu0 %v2939_v0  ;;  %v1424_v63 = vld [vmem:[%s4032_s11 + $0x600] sm:$0xff]  ;;  %v1330_v0 = vld [vmem:[%s4032_s11 + $0x310] sm:$0xff]  ;;  %v1483_v47 = vld [vmem:[%s4032_s11 + $0x7d8] sm:$0xff] }
 0x1f0   : > { %2844 = vmatprep.subr.bf16.mxu1 %v2843_v5  ;;  %v1384_v5 = vld [vmem:[%s4032_s11 + $0x4c0] sm:$0xff]  ;;  %v2961_v10 = vpack.c.bf16 %v1333_v2, %v1330_v0  ;;  %v2883_v0 = vpack.c.bf16 %v1458_v58, %v1455_v55  ;;  %v1457_v2 = vld [vmem:[%s4032_s11 + $0x708] sm:$0xff]  ;;  %v1479_v48 = vld [vmem:[%s4032_s11 + $0x7b8] sm:$0xff] }
 0x1f1   : > { %v1489_v55 = vld [vmem:[%s4032_s11 + $0x808] sm:$0xff] }
 0x1f2   : > { %2942 = vmatpush3.bf16.msra.mxu0 %v2941_v11  ;;  %v2865_v11 = vpack.c.bf16 %v1427_v4, %v1424_v63  ;;  %v1363_v63 = vld [vmem:[%s4032_s11 + $0x418] sm:$0xff]  ;;  %v1417_v4 = vld [vmem:[%s4032_s11 + $0x5c8] sm:$0xff] }
 0x1f3   : > { %2846 = vmatpush1.bf16.msra.mxu1 %v2845_v12  ;;  %2944 = vmatprep.subr.bf16.mxu0 %v2943_v14  ;;  %v2963_v12 = vpack.c.bf16 %v1387_v6, %v1384_v5  ;;  %v1430_v14 = vld [vmem:[%s4032_s11 + $0x630] sm:$0xff]  ;;  %v1461_v5 = vld [vmem:[%s4032_s11 + $0x728] sm:$0xff]  ;;  %v1464_v6 = vld [vmem:[%s4032_s11 + $0x740] sm:$0xff] }
 0x1f4   : > { %2848 = vmatprep.subr.bf16.mxu1 %v2847_v18  ;;  %v1433_v18 = vld [vmem:[%s4032_s11 + $0x648] sm:$0xff]  ;;  %v2887_v15 = vpack.c.bf16 %v1464_v6, %v1461_v5  ;;  %v1491_v5 = vld [vmem:[%s4032_s11 + $0x818] sm:$0xff] }
 0x1f5   : > { %v1485_v58 = vld [vmem:[%s4032_s11 + $0x7e8] sm:$0xff] }
 0x1f6   : > { %2946 = vmatpush3.bf16.msra.mxu0 %v2945_v26  ;;  %v4572_v26 = vld [vmem:[%s4019_s12 + $0x28] sm:$0xff] }
 0x1f7   : > { %2850 = vmatpush1.bf16.msra.mxu1 %v2849_v27  ;;  %2948 = vmatprep.subr.bf16.mxu0 %v2947_v28  ;;  %v2869_v27 = vpack.c.bf16 %v1433_v18, %v1430_v14  ;;  %v2967_v28 = vpack.c.bf16 %v1393_v22, %v1390_v20  ;;  %v1369_v14 = vld [vmem:[%s4032_s11 + $0x448] sm:$0xff]  ;;  %v1423_v18 = vld [vmem:[%s4032_s11 + $0x5f8] sm:$0xff] }
 0x1f8   : > { %2852 = vmatprep.subr.bf16.mxu1 %v2851_v32  ;;  %v1439_v32 = vld [vmem:[%s4032_s11 + $0x678] sm:$0xff] }
 0x1f9   : > { %v1467_v22 = vld [vmem:[%s4032_s11 + $0x758] sm:$0xff] }
 0x1fa   : > { %2950 = vmatpush3.bf16.msra.mxu0 %v2949_v39  ;;  %v2873_v39 = vpack.c.bf16 %v1439_v32, %v1436_v29  ;;  %v2891_v32 = vpack.c.bf16 %v1470_v23, %v1467_v22 }
 0x1fb   : > { %2854 = vmatpush1.bf16.msra.mxu1 %v2853_v40  ;;  %2952 = vmatprep.subr.bf16.mxu0 %v2951_v41  ;;  %v2971_v40 = vpack.c.bf16 %v1399_v35, %v1396_v34  ;;  %v1442_v41 = vld [vmem:[%s4032_s11 + $0x690] sm:$0xff]  ;;  %v1469_v34 = vld [vmem:[%s4032_s11 + $0x768] sm:$0xff] }
 0x1fc   : > { %2856 = vmatprep.subr.bf16.mxu1 %v2855_v45  ;;  %v1402_v45 = vld [vmem:[%s4032_s11 + $0x550] sm:$0xff]  ;;  %v2877_v50 = vpack.c.bf16 %v1445_v44, %v1442_v41 }
 0x1fd   : > { %v1474_v35 = vld [vmem:[%s4032_s11 + $0x790] sm:$0xff] }
 0x1fe   : > { %2954 = vmatpush3.bf16.msra.mxu0 %v2953_v51  ;;  %v2975_v51 = vpack.c.bf16 %v1405_v46, %v1402_v45  ;;  %v1475_v45 = vld [vmem:[%s4032_s11 + $0x798] sm:$0xff]  ;;  %v1480_v46 = vld [vmem:[%s4032_s11 + $0x7c0] sm:$0xff] }
 0x1ff   : > { %2858 = vmatpush1.bf16.msra.mxu1 %v2857_v52  ;;  %2956 = vmatprep.subr.bf16.mxu0 %v2955_v53  ;;  %v1448_v52 = vld [vmem:[%s4032_s11 + $0x6c0] sm:$0xff]  ;;  %v1354_v53 = vld [vmem:[%s4032_s11 + $0x3d0] sm:$0xff] }
 0x200   : > { %2860 = vmatprep.subr.bf16.mxu1 %v2859_v56  ;;  %v1408_v56 = vld [vmem:[%s4032_s11 + $0x580] sm:$0xff]  ;;  %v2977_v59 = vpack.c.bf16 %v1357_v33, %v1354_v53  ;;  %v2881_v60 = vpack.c.bf16 %v1451_v21, %v1448_v52  ;;  %v2995_v52 = vpack.c.bf16 %v1483_v47, %v1480_v46  ;;  %v1478_v53 = vld [vmem:[%s4032_s11 + $0x7b0] sm:$0xff] }
 0x201   : > { %v1432_v33 = vld [vmem:[%s4032_s11 + $0x640] sm:$0xff] }
 0x202   : > { %2958 = vmatpush3.bf16.msra.mxu0 %v2957_v61  ;;  %v2979_v61 = vpack.c.bf16 %v1411_v57, %v1408_v56  ;;  %v1481_v56 = vld [vmem:[%s4032_s11 + $0x7c8] sm:$0xff]  ;;  %v1486_v57 = vld [vmem:[%s4032_s11 + $0x7f0] sm:$0xff]  ;;  %v1512_v46 = vld [vmem:[%s4032_s11 + $0x8c0] sm:$0xff] }
 0x203   : > { %2862 = vmatpush1.bf16.msra.mxu1 %v2861_v37  ;;  %2960 = vmatprep.subr.bf16.mxu0 %v2959_v62  ;;  %v1454_v37 = vld [vmem:[%s4032_s11 + $0x6f0] sm:$0xff]  ;;  %v1360_v62 = vld [vmem:[%s4032_s11 + $0x400] sm:$0xff] }
 0x204   : > { %2864 = vmatprep.subr.bf16.mxu1 %v2863_v3  ;;  %v1414_v3 = vld [vmem:[%s4032_s11 + $0x5b0] sm:$0xff]  ;;  %v2981_v7 = vpack.c.bf16 %v1363_v63, %v1360_v62  ;;  %v2885_v8 = vpack.c.bf16 %v1457_v2, %v1454_v37  ;;  %v2999_v37 = vpack.c.bf16 %v1489_v55, %v1486_v57  ;;  %v1484_v62 = vld [vmem:[%s4032_s11 + $0x7e0] sm:$0xff]  ;;  %v1487_v2 = vld [vmem:[%s4032_s11 + $0x7f8] sm:$0xff] }
 0x205   : > { %1798 = vmatmul.mubr.f32.vlgmr.msra.gmra.mrb[2].mxu0 %v4421_v1  ;;  %v1345_v1 = vld [vmem:[%s4032_s11 + $0x388] sm:$0xff]  ;;  %v1438_v63 = vld [vmem:[%s4032_s11 + $0x670] sm:$0xff]  ;;  %v1515_v57 = vld [vmem:[%s4032_s11 + $0x8d8] sm:$0xff] }
 0x206   : > { %1656 = vmatmul.mubr.f32.vlgmr.msra.gmra.mrb[6].mxu1 %v4559_v9  ;;  %2962 = vmatpush3.bf16.msra.mxu0 %v2961_v10  ;;  %v2969_v49 = vpack.c.bf16 %v1345_v1, %v1342_v30  ;;  %v2983_v10 = vpack.c.bf16 %v1417_v4, %v1414_v3  ;;  %v1466_v30 = vld [vmem:[%s4032_s11 + $0x750] sm:$0xff]  ;;  %v1372_v1 = vld [vmem:[%s4032_s11 + $0x460] sm:$0xff]  ;;  %v1495_v4 = vld [vmem:[%s4032_s11 + $0x838] sm:$0xff] }
 0x207   : > { %2866 = vmatpush1.bf16.msra.mxu1 %v2865_v11  ;;  %2964 = vmatprep.subr.bf16.mxu0 %v2963_v12  ;;  %v1460_v11 = vld [vmem:[%s4032_s11 + $0x720] sm:$0xff]  ;;  %v1366_v12 = vld [vmem:[%s4032_s11 + $0x430] sm:$0xff] }
 0x208   : > { %2868 = vmatprep.subr.bf16.mxu1 %v2867_v17  ;;  %1867 = vmatprep.mubr.f32.mxu0 %v4432_v13  ;;  %v2875_v13 = vpack.c.bf16 %v1446_v38, %v1443_v36  ;;  %v1420_v17 = vld [vmem:[%s4032_s11 + $0x5e0] sm:$0xff]  ;;  %v1477_v36 = vld [vmem:[%s4032_s11 + $0x7a8] sm:$0xff]  ;;  %v1518_v55 = vld [vmem:[%s4032_s11 + $0x8f0] sm:$0xff] }
 0x209   : > { %1726 = vmatprep.mubr.f32.mxu1 %v4572_v26  ;;  %v2987_v29 = vpack.c.bf16 %v1423_v18, %v1420_v17  ;;  %v1473_v38 = vld [vmem:[%s4032_s11 + $0x788] sm:$0xff]  ;;  %v2991_v41 = vpack.c.bf16 %v1477_v36, %v1474_v35  ;;  %v1492_v3 = vld [vmem:[%s4032_s11 + $0x820] sm:$0xff]  ;;  %v1506_v35 = vld [vmem:[%s4032_s11 + $0x890] sm:$0xff] }
 0x20a   : > { %2966 = vmatpush3.bf16.msra.mxu0 %v2965_v25  ;;  %v2985_v25 = vpack.c.bf16 %v1369_v14, %v1366_v12  ;;  %v1447_v12 = vld [vmem:[%s4032_s11 + $0x6b8] sm:$0xff]  ;;  %v1501_v17 = vld [vmem:[%s4032_s11 + $0x868] sm:$0xff] }
 0x20b   : > { %2870 = vmatpush1.bf16.msra.mxu1 %v2869_v27  ;;  %2968 = vmatprep.subr.bf16.mxu0 %v2967_v28  ;;  %v2889_v28 = vpack.c.bf16 %v1463_v16, %v1460_v11  ;;  %v1444_v11 = vld [vmem:[%s4032_s11 + $0x6a0] sm:$0xff]  ;;  %v1498_v16 = vld [vmem:[%s4032_s11 + $0x850] sm:$0xff]  ;;  %v1497_v18 = vld [vmem:[%s4032_s11 + $0x848] sm:$0xff] }
 0x20c   : > { %2872 = vmatprep.subr.bf16.mxu1 %v2871_v31  ;;  %v1375_v31 = vld [vmem:[%s4032_s11 + $0x478] sm:$0xff]  ;;  %v3005_v22 = vpack.c.bf16 %v1447_v12, %v1444_v11 }
 0x20e   : > { %2970 = vmatpush3.bf16.msra.mxu0 %v2969_v49  ;;  %v1476_v49 = vld [vmem:[%s4032_s11 + $0x7a0] sm:$0xff] }
 0x20f   : > { %2874 = vmatpush1.bf16.msra.mxu1 %v2873_v39  ;;  %2972 = vmatprep.subr.bf16.mxu0 %v2971_v40  ;;  %v2989_v39 = vpack.c.bf16 %v1375_v31, %v1372_v1  ;;  %v2893_v40 = vpack.c.bf16 %v1469_v34, %v1466_v30  ;;  %v2895_v44 = vpack.c.bf16 %v1476_v49, %v1473_v38  ;;  %v1499_v1 = vld [vmem:[%s4032_s11 + $0x858] sm:$0xff]  ;;  %v1504_v31 = vld [vmem:[%s4032_s11 + $0x880] sm:$0xff] }
 0x210   : > { %2876 = vmatprep.subr.bf16.mxu1 %v2875_v13  ;;  %v1429_v13 = vld [vmem:[%s4032_s11 + $0x628] sm:$0xff]  ;;  %v1503_v34 = vld [vmem:[%s4032_s11 + $0x878] sm:$0xff] }
 0x212   : > { %2974 = vmatpush3.bf16.msra.mxu0 %v2973_v19  ;;  %v1482_v19 = vld [vmem:[%s4032_s11 + $0x7d0] sm:$0xff] }
 0x213   : > { %2878 = vmatpush1.bf16.msra.mxu1 %v2877_v50  ;;  %2976 = vmatprep.subr.bf16.mxu0 %v2975_v51  ;;  %v2993_v50 = vpack.c.bf16 %v1429_v13, %v1426_v43  ;;  %v2897_v51 = vpack.c.bf16 %v1475_v45, %v1472_v42  ;;  %v2899_v21 = vpack.c.bf16 %v1482_v19, %v1479_v48  ;;  %v1505_v43 = vld [vmem:[%s4032_s11 + $0x888] sm:$0xff]  ;;  %v1510_v13 = vld [vmem:[%s4032_s11 + $0x8b0] sm:$0xff] }
 0x214   : > { %2880 = vmatprep.subr.bf16.mxu1 %v2879_v54  ;;  %v1435_v54 = vld [vmem:[%s4032_s11 + $0x658] sm:$0xff]  ;;  %v2915_v42 = vpack.c.bf16 %v1506_v35, %v1503_v34  ;;  %v1509_v45 = vld [vmem:[%s4032_s11 + $0x8a8] sm:$0xff] }
 0x216   : > { %2978 = vmatpush3.bf16.msra.mxu0 %v2977_v59  ;;  %v1488_v59 = vld [vmem:[%s4032_s11 + $0x800] sm:$0xff] }
 0x217   : > { %2882 = vmatpush1.bf16.msra.mxu1 %v2881_v60  ;;  %2980 = vmatprep.subr.bf16.mxu0 %v2979_v61  ;;  %v2997_v60 = vpack.c.bf16 %v1435_v54, %v1432_v33  ;;  %v2901_v61 = vpack.c.bf16 %v1481_v56, %v1478_v53  ;;  %v2919_v53 = vpack.c.bf16 %v1512_v46, %v1509_v45  ;;  %v1511_v33 = vld [vmem:[%s4032_s11 + $0x8b8] sm:$0xff]  ;;  %v1516_v54 = vld [vmem:[%s4032_s11 + $0x8e0] sm:$0xff] }
 0x218   : > { %2884 = vmatprep.subr.bf16.mxu1 %v2883_v0  ;;  %v1441_v0 = vld [vmem:[%s4032_s11 + $0x688] sm:$0xff] }
 0x219   : > { %v2269_v20 = vpop.f32.mrb[0].mxu1  ;;  %v3001_v6 = vpack.c.bf16 %v1441_v0, %v1438_v63  ;;  %v1471_v63 = vld [vmem:[%s4032_s11 + $0x778] sm:$0xff]  ;;  %v2923_v0 = vpack.c.bf16 %v1518_v55, %v1515_v57 }
 0x21a   : > { %2982 = vmatpush3.bf16.msra.mxu0 %v2981_v7  ;;  %v2270_v24 = vpop.f32.mrb[1].mxu1  ;;  %v2905_v7 = vpack.c.bf16 %v1487_v2, %v1484_v62  ;;  %v1468_v62 = vld [vmem:[%s4032_s11 + $0x760] sm:$0xff]  ;;  %v1517_v2 = vld [vmem:[%s4032_s11 + $0x8e8] sm:$0xff] }
 0x21b   : > { %2886 = vmatpush1.bf16.msra.mxu1 %v2885_v8  ;;  %v4616_v27 = vadd.f32 %v2270_v24, %v2269_v20  ;;  %2984 = vmatprep.subr.bf16.mxu0 %v2983_v10  ;;  %v3003_v8 = vpack.c.bf16 %v1495_v4, %v1492_v3  ;;  %v1490_v10 = vld [vmem:[%s4032_s11 + $0x810] sm:$0xff]  ;;  %v1500_v20 = vld [vmem:[%s4032_s11 + $0x860] sm:$0xff]  ;;  %v3007_v24 = vpack.c.bf16 %v1501_v17, %v1498_v16 }
 0x21c   : > { %2888 = vmatprep.subr.bf16.mxu1 %v2887_v15  ;;  %v1493_v15 = vld [vmem:[%s4032_s11 + $0x828] sm:$0xff]  ;;  %v2911_v30 = vpack.c.bf16 %v1500_v20, %v1497_v18  ;;  %v3021_v4 = vpack.c.bf16 %v1471_v63, %v1468_v62 }
 0x21d   : > { %v2909_v23 = vpack.c.bf16 %v1493_v15, %v1490_v10  ;;  %v499_v10 = vld [vmem:[#allocation2 + $0x10] sm:$0xff] }
 0x21e   : > { %2986 = vmatpush3.bf16.msra.mxu0 %v2985_v25  ;;  %v1496_v25 = vld [vmem:[%s4032_s11 + $0x840] sm:$0xff] }
 0x21f   : > { %2890 = vmatpush1.bf16.msra.mxu1 %v2889_v28  ;;  %2988 = vmatprep.subr.bf16.mxu0 %v2987_v29  ;;  %v1450_v28 = vld [vmem:[%s4032_s11 + $0x6d0] sm:$0xff]  ;;  %v1453_v29 = vld [vmem:[%s4032_s11 + $0x6e8] sm:$0xff]  ;;  %v2913_v38 = vpack.c.bf16 %v1499_v1, %v1496_v25 }
 0x220   : > { %2892 = vmatprep.subr.bf16.mxu1 %v2891_v32  ;;  %v1507_v32 = vld [vmem:[%s4032_s11 + $0x898] sm:$0xff]  ;;  %v3009_v36 = vpack.c.bf16 %v1453_v29, %v1450_v28 }
 0x221   : > { %v3011_v49 = vpack.c.bf16 %v1507_v32, %v1504_v31  ;;  %v1224_v31 = vld [vmem:[#allocation3 + $0x8] sm:$0xff] }
 0x222   : > { %2990 = vmatpush3.bf16.msra.mxu0 %v2989_v39  ;;  %v1502_v39 = vld [vmem:[%s4032_s11 + $0x870] sm:$0xff] }
 0x223   : > { %2894 = vmatpush1.bf16.msra.mxu1 %v2893_v40  ;;  %2992 = vmatprep.subr.bf16.mxu0 %v2991_v41  ;;  %v1456_v40 = vld [vmem:[%s4032_s11 + $0x700] sm:$0xff]  ;;  %v1459_v41 = vld [vmem:[%s4032_s11 + $0x718] sm:$0xff]  ;;  %v2917_v48 = vpack.c.bf16 %v1505_v43, %v1502_v39 }
 0x224   : > { %2896 = vmatprep.subr.bf16.mxu1 %v2895_v44  ;;  %v1513_v44 = vld [vmem:[%s4032_s11 + $0x8c8] sm:$0xff]  ;;  %v3013_v47 = vpack.c.bf16 %v1459_v41, %v1456_v40  ;;  %v1225_v39 = vld [vmem:[#allocation3 + $0x10] sm:$0xff] }
 0x225   : > { %1868 = vmatmul.mubr.f32.vlgmr.msra.gmra.mrb[4].mxu0 %v4559_v9  ;;  %v2903_v9 = vpack.c.bf16 %v1488_v59, %v1485_v58  ;;  %v3015_v19 = vpack.c.bf16 %v1513_v44, %v1510_v13  ;;  %v1959_v13 = vld [vmem:[%s4042_s26] sm:$0x7] (!%p2228_p1) }
 0x226   : > { %2994 = vmatpush3.bf16.msra.mxu0 %v2993_v50  ;;  %1937 = vmatprep.mubr.f32.mxu0 %v4572_v26  ;;  %v1494_v26 = vld [vmem:[%s4032_s11 + $0x830] sm:$0xff]  ;;  %v1508_v50 = vld [vmem:[%s4032_s11 + $0x8a0] sm:$0xff] }
 0x227   : > { %2898 = vmatpush1.bf16.msra.mxu1 %v2897_v51  ;;  %2996 = vmatprep.subr.bf16.mxu0 %v2995_v52  ;;  %v2907_v14 = vpack.c.bf16 %v1494_v26, %v1491_v5  ;;  %v1462_v51 = vld [vmem:[%s4032_s11 + $0x730] sm:$0xff]  ;;  %v1465_v52 = vld [vmem:[%s4032_s11 + $0x748] sm:$0xff] }
 0x228   : > { %2900 = vmatprep.subr.bf16.mxu1 %v2899_v21  ;;  %v1519_v21 = vld [vmem:[%s4032_s11 + $0x8f8] sm:$0xff]  ;;  %v3017_v59 = vpack.c.bf16 %v1465_v52, %v1462_v51  ;;  %v1230_v26 = vld [vmem:[%s4019_s12 + $0x20] sm:$0xff] }
 0x22a   : > { %2998 = vmatpush3.bf16.msra.mxu0 %v2997_v60 }
 0x22b   : > { %2902 = vmatpush1.bf16.msra.mxu1 %v2901_v61  ;;  %3000 = vmatprep.subr.bf16.mxu0 %v2999_v37  ;;  %v2921_v61 = vpack.c.bf16 %v1511_v33, %v1508_v50  ;;  %v3019_v37 = vpack.c.bf16 %v1519_v21, %v1516_v54 }
 0x22c   : > { %2904 = vmatprep.subr.bf16.mxu1 %v2903_v9  ;;  %v1514_v9 = vld [vmem:[%s4032_s11 + $0x8d0] sm:$0xff] }
 0x22d   : > { %v2925_v5 = vpack.c.bf16 %v1517_v2, %v1514_v9 }
 0x22e   : > { %3002 = vmatpush3.bf16.msra.mxu0 %v3001_v6 }
 0x22f   : > { %2906 = vmatpush1.bf16.msra.mxu1 %v2905_v7  ;;  %3004 = vmatprep.subr.bf16.mxu0 %v3003_v8 }
 0x230   : > { %2908 = vmatprep.subr.bf16.mxu1 %v2907_v14  ;;  %v497_v14 = vld [vmem:[#allocation2] sm:$0xff] }
 0x232   : > { %3006 = vmatpush3.bf16.msra.mxu0 %v3005_v22 }
 0x233   : > { %2910 = vmatpush1.bf16.msra.mxu1 %v2909_v23  ;;  %3008 = vmatprep.subr.bf16.mxu0 %v3007_v24 }
 0x234   : > { %2912 = vmatprep.subr.bf16.mxu1 %v2911_v30  ;;  %v1223_v30 = vld [vmem:[#allocation3] sm:$0xff] }
 0x236   : > { %3010 = vmatpush3.bf16.msra.mxu0 %v3009_v36 }
 0x237   : > { %2914 = vmatpush1.bf16.msra.mxu1 %v2913_v38  ;;  %3012 = vmatprep.subr.bf16.mxu0 %v3011_v49 }
 0x238   : > { %2916 = vmatprep.subr.bf16.mxu1 %v2915_v42  ;;  %v1961_v42 = vlaneseq (!%p2228_p1) }
 0x239   : > { %v2304_v56 = vpop.f32.mrb[2].mxu1 }
 0x23a   : > { %v2305_v58 = vpop.f32.mrb[3].mxu1  ;;  %3014 = vmatpush3.bf16.msra.mxu0 %v3013_v47  ;;  %v1962_v43 = vshrl.u32 (!%p2228_p1), %v1961_v42, 7 }
 0x23b   : > { %v2306_v60 = vadd.f32 %v2305_v58, %v2304_v56  ;;  %2918 = vmatpush1.bf16.msra.mxu1 %v2917_v48  ;;  %3016 = vmatprep.subr.bf16.mxu0 %v3015_v19  ;;  %v1982_v48 = vld [vmem:[%s4049_s16] sm:$0x7] (!%p2228_p1) }
 0x23c   : > { %2920 = vmatprep.subr.bf16.mxu1 %v2919_v53  ;;  %v1963_v44 = vsub.s32 (!%p2228_p1), 0, %v1962_v43  ;;  %v1967_v45 = vsub.s32 (!%p2228_p1), 1, %v1962_v43  ;;  %v1971_v46 = vsub.s32 (!%p2228_p1), 2, %v1962_v43 }
 0x23d   : > { %v1144_v3 = vadd.f32 %v2306_v60, %v4616_v27  ;;  %v498_v27 = vld [vmem:[#allocation2 + $0x8] sm:$0xff] }
 0x23e   : > { %3018 = vmatpush3.bf16.msra.mxu0 %v3017_v59  ;;  %v1964_v50 = vrot.slane (!%p2228_p1), %v1959_v13, %v1963_v44  ;;  %v1968_v51 = vrot.slane (!%p2228_p1), %v1959_v13, %v1967_v45  ;;  %v1972_v54 = vrot.slane (!%p2228_p1), %v1959_v13, %v1971_v46  ;;  %v1987_v56 = vrot.slane (!%p2228_p1), %v1982_v48, %v1963_v44 }
 0x23f   : > { %2922 = vmatpush1.bf16.msra.mxu1 %v2921_v61  ;;  %3020 = vmatprep.subr.bf16.mxu0 %v3019_v37  ;;  %v1991_v55 = vrot.slane (!%p2228_p1), %v1982_v48, %v1967_v45  ;;  %v1995_v60 = vrot.slane (!%p2228_p1), %v1982_v48, %v1971_v46 }
 0x240   : > { %2924 = vmatprep.subr.bf16.mxu1 %v2923_v0 }
 0x242   : > { %3022 = vmatpush3.bf16.msra.mxu0 %v3021_v4 }
 0x243   : > { %2926 = vmatpush1.bf16.msra.mxu1 %v2925_v5 }
 0x245   : > { %1938 = vmatmul.mubr.f32.vlgmr.msra.gmra.mrb[6].mxu0 %v1230_v26 }
 0x246   : > { %1727 = vmatmul.mubr.f32.vlgmr.msra.gmra.mrb[6].mxu1 %v1230_v26 }
 0x259   : > { %v2339_v6 = vpop.f32.mrb[4].mxu1 }
 0x25a   : > { %v2340_v7 = vpop.f32.mrb[5].mxu1 }
 0x25b   : > { %v2341_v8 = vadd.f32 %v2340_v7, %v2339_v6 }
 0x25d   : > { %v1214_v11 = vadd.f32 %v2341_v8, %v1144_v3 }
 0x25f   : > { %v1219_v12 = vadd.f32 %v1214_v11, %v499_v10 }
 0x261   : > { %1222 = vst [vmem:[#allocation2 + $0x10] sm:$0xff] %v1219_v12 }
 0x268   : > { %v1955_v58 = vld [vmem:[#allocation2 + $0x10] sm:$0xff] (!%p2228_p1) }
 0x2b8   : > { %v1002_v15 = vpop.f32.mrb[0].mxu0 }
 0x2b9   : > { %v1217_v16 = vadd.f32 %v1002_v15, %v497_v14  ;;  %v1004_v17 = vpop.f32.mrb[1].mxu0 }
 0x2ba   : > { %v1218_v18 = vadd.f32 %v1004_v17, %v498_v27 }
 0x2bb   : > { %1220 = vst [vmem:[#allocation2] sm:$0xff] %v1217_v16 }
 0x2bc   : > { %1221 = vst [vmem:[#allocation2 + $0x8] sm:$0xff] %v1218_v18 }
 0x2c2   : > { %v1953_v53 = vld [vmem:[#allocation2] sm:$0xff] (!%p2228_p1) }
 0x2c3   : > { %v1954_v33 = vld [vmem:[#allocation2 + $0x8] sm:$0xff] (!%p2228_p1) }
 0x2d8   : > { %v2374_v20 = vpop.f32.mrb[2].mxu0 }
 0x2d9   : > { %v2375_v22 = vpop.f32.mrb[3].mxu0 }
 0x2da   : > { %v2376_v23 = vadd.f32 %v2375_v22, %v2374_v20 }
 0x2f8   : > { %v2409_v24 = vpop.f32.mrb[4].mxu0 }
 0x2f9   : > { %v2410_v25 = vpop.f32.mrb[5].mxu0 }
 0x2fa   : > { %v2411_v28 = vadd.f32 %v2410_v25, %v2409_v24 }
 0x2fc   : > { %v1870_v29 = vadd.f32 %v2411_v28, %v2376_v23 }
 0x318   : > { %v2444_v1 = vpop.f32.mrb[6].mxu0 }
 0x319   : > { %v1728_v32 = vpop.f32.mrb[6].mxu1  ;;  %v2445_v34 = vpop.f32.mrb[7].mxu0 }
 0x31a   : > { %v1943_v35 = vadd.f32 %v1728_v32, %v1223_v30  ;;  %v1730_v36 = vpop.f32.mrb[7].mxu1  ;;  %v2446_v38 = vadd.f32 %v2445_v34, %v2444_v1  ;;  %1952 = sbr.rel (%p2228_p1) target bundleno = 815 (0x32f), region = 76 }
 0x31b   : > { %v1944_v49 = vadd.f32 %v1730_v36, %v1224_v31 }
 0x31c   : > { %1946 = vst [vmem:[#allocation3] sm:$0xff] %v1943_v35  ;;  %v1940_v40 = vadd.f32 %v2446_v38, %v1870_v29 }
 0x31d   : > { %1947 = vst [vmem:[#allocation3 + $0x8] sm:$0xff] %v1944_v49 }
 0x31e   : > { %v1945_v41 = vadd.f32 %v1940_v40, %v1225_v39 }
 0x320   : > { %1948 = vst [vmem:[#allocation3 + $0x10] sm:$0xff] %v1945_v41 }
 0x323   : > { %v1956_v47 = vld [vmem:[#allocation3] sm:$0xff] }
 0x324   : > { %v1957_v19 = vld [vmem:[#allocation3 + $0x8] sm:$0xff]  ;;  %v1976_v21 = vmul.f32 %v1964_v50, %v1956_v47 }
 0x325   : > { %v1977_v57 = vmul.f32 %v1968_v51, %v1957_v19 }
 0x326   : > { %v1979_v61 = vadd.f32 %v1976_v21, %v1953_v53 }
 0x327   : > { %v1958_v52 = vld [vmem:[#allocation3 + $0x10] sm:$0xff]  ;;  %v1980_v37 = vadd.f32 %v1977_v57, %v1954_v33 }
 0x328   : > { %v1978_v59 = vmul.f32 %v1972_v54, %v1958_v52  ;;  %v1999_v63 = vadd.f32 %v1987_v56, %v1979_v61 }
 0x329   : > { %v2000_v0 = vadd.f32 %v1991_v55, %v1980_v37 }
 0x32a   : > { %v1981_v62 = vadd.f32 %v1978_v59, %v1955_v58  ;;  %2002 = vst [vmem:[%s4056_s24] sm:$0xff] %v1999_v63 }
 0x32b   : > { %2003 = vst [vmem:[%s4056_s24 + $0x8] sm:$0xff] %v2000_v0 }
 0x32c   : > { %v2001_v9 = vadd.f32 %v1995_v60, %v1981_v62 }
 0x32e   : > { %2004 = vst [vmem:[%s4056_s24 + $0x10] sm:$0xff] %v2001_v9 }
 0x32f PF: > { %s4868_s1 = sld [smem:[#allocation27_spill]]  ;;  %s2020_s9 = sshll.u32 %s4056_s24, 4  ;;  %s2021_s9 = int_to_ptr.vmem [resolvable:$true] %s2020_s9 }
 0x330   : > { %s4869_s18 = sld [smem:[#allocation41_spill]]  ;;  %s2006_s19 = scalar_lea.sflag [#allocation6], %s4039_s7 }
 0x331   : > { %s3380_s11 = scalar_lea.vmem %s2021_s9, 384  ;;  %p4870_p6 = scmp.ne.s32.totalorder %s4850_s6, 0 }
 0x332   : > { %p3381_p12 = scmp.ne.s32.totalorder %s2021_s9, %s3380_s11  ;;  %s3558_s3 = smov [#allocation15]  }
 0x333   : > { %s3384_s26 = sshll.u32 %s3558_s3, 4  ;;  %s3385_s26 = int_to_ptr.vmem [resolvable:$false] %s3384_s26 }
 0x334   : > { %p3382_p3 = pnand %p3381_p12, %p4870_p6  ;;  %s3386_s14 = scalar_lea.vmem %s3385_s26, 768 }
 0x335   : > { %s2236_s12 = smul.u32 384, %s4868_s1  ;;  %p3387_p7 = scmp.lt.s32.totalorder %s2021_s9, %s3385_s26 }
 0x336   : > { %p3383_p5 = pneg %p3382_p3  ;;  %p3388_p10 = scmp.lt.s32.totalorder %s3386_s14, %s3380_s11 }
 0x337   : > { %s4701_s28 = scalar_lea.hbm %s4869_s18, %s2236_s12 }
 0x338   : > { %p3389_p2 = por %p3388_p10, %p3387_p7 }
 0x33a   : > { %p3390_p8 = pnand %p3389_p2, %p3383_p5 }
 0x33c   : > { %3393 = shalt.err (!%p3390_p8)
}
 0x33d   : > { %s3394_s7 = scalar_lea.hbm %s4701_s28, 384  ;;  %s3398_s24 = scalar_lea.hbm %s4869_s18, 768 }
 0x33e   : > { %p3395_p4 = scmp.ne.s32.totalorder %s4701_s28, %s3394_s7  ;;  %p3399_p0 = scmp.lt.u32.totalorder %s4701_s28, %s4869_s18 }
 0x33f   : > { %p3400_p13 = scmp.lt.u32.totalorder %s3398_s24, %s3394_s7  ;;  %p3402_p12 = scmp.lt.u32.totalorder %s3394_s7, %s4701_s28 }
 0x340   : > { %p3396_p9 = pnand %p3395_p4, %p4870_p6 }
 0x341   : > { %p3401_p1 = por %p3400_p13, %p3399_p0 }
 0x342   : > { %p3397_p11 = pneg %p3396_p9 }
 0x343   : > { %p3403_p3 = por %p3402_p12, %p3401_p1 }
 0x345   : > { %p3404_p5 = pnand %p3403_p3, %p3397_p11 }
 0x347   : > { %3407 = shalt.err (!%p3404_p5)
}
 0x348   : > { %3055 = dma.vmem_to_hbm [thread:$0]  (%p4870_p6), %s2021_s9, 384, %s4701_s28, %s2006_s19  }
 0x349 PF: > { %p3083_p7 = scmp.ge.s32.totalorder %s3546_s10, 2  ;;  %s2032_s1 = sand.u32 1, %s3494_s21  }
 0x34a   : > { %p4871_p10 = scmp.ne.s32.totalorder %s4851_s13, 0  ;;  %s2033_s12 = scalar_lea.sflag [#allocation6], %s2032_s1 }
 0x34c   : > { %p3077_p2 = pnand %p3083_p7, %p4871_p10 }
 0x34e   : > { %3489 = dma.done.wait (!%p3077_p2), %s2033_s12, 384  }
 0x34f   : > { %3491 = vsyncadd (!%p3077_p2), %s2033_s12, 4294966912  ;;  %s31_s10 = sadd.s32 1, %s3546_s10   ;;  %s4873_s24 = sld [smem:[#allocation23_spill]] }
 0x350   : > { %p4726_p8 = scmp.ge.s32.totalorder %s31_s10, 6   ;;  %s4874_s25 = sld [smem:[#allocation24_spill]] }
 0x351   : > { %s4875_s26 = sld [smem:[#allocation34_spill]]  ;;  %s4876_s27 = sld [smem:[#allocation25_spill]] }
 0x352   : > { %s4877_s6 = sld [smem:[#allocation32_spill]]  ;;  %s4878_s7 = sld [smem:[#allocation28_spill]] }
 0x353   : > { %s4879_s13 = sld [smem:[#allocation30_spill]]  ;;  %s4880_s9 = sld [smem:[#allocation31_spill]] }
 0x354   : > { %s4882_s21 = smov %s3498_s22  ;;  %s4883_s22 = smov %s3502_s23 }
 0x355   : > { %s4884_s23 = smov %s3917_s15  ;;  %s4885_s28 = smov %s3526_s29 }
 0x356   : > { %s4887_s30 = smov %s3538_s8  ;;  %30 = sbr.rel (!%p4726_p8) target bundleno = 22 (0x16), region = 158 }
 0x358   : > { %s4886_s29 = smov %s4877_s6 }
 0x359   : > { %s4888_s8 = smov %s4879_s13 }
 0x35d   :  { %2038 = vsyncpa [#allocation5], 1 }
 0x35e   :  { %2040 = vsyncpa [#allocation5 + $0x1], 1 }
 0x35f   :  { %2041 = vsyncpa [#allocation8], 1 }
 0x360   :  { %2043 = vsyncpa [#allocation8 + $0x1], 1 }
 0x361   :  { %2044 = vsyncpa [#allocation11], 1 }
 0x362   :  { %2046 = vsyncpa [#allocation11 + $0x1], 1 }
 0x363   :  { %2047 = vsyncpa [#allocation14], 1 }
 0x364   :  { %2049 = vsyncpa [#allocation14 + $0x1], 1 }
 0x365   :  { %2050 = vsyncpa [#allocation6], 1 }
 0x366   :  { %2052 = vsyncpa [#allocation6 + $0x1], 1 }

</bundles_post_ra>
